<compile_context>
chip_gen: v5e
topology: v5e:2x2
jax: 0.10.0
libtpu: 0.0.40
codegen_flags: <defaults>
</compile_context>

<pallas_src>
import functools

import jax
import jax.numpy as jnp
from jax.experimental import pallas as pl
from jax.experimental.pallas import tpu as pltpu


def _lstm_chunk_kernel(x_ref, len_ref, wih_ref, whh_ref, b_ref, wl_ref, bl_ref,
                       out_ref, xp_ref, h_ref, c_ref, *, unroll):
    """One (batch-tile, time-chunk) grid step of the recurrence.

    x_ref  : (TC*Bb, D)    time-major rows (Bb consecutive rows per timestep)
    len_ref: (Bb, 1) int32 sequence lengths for this batch tile (0 for pad rows)
    wih_ref: (D,  4*Hp)    gate-padded, pre-transposed input weights
    whh_ref: (Hp, 4*Hp)    gate-padded, pre-transposed recurrent weights
    b_ref  : (1,  4*Hp)    combined b_ih + b_hh (gate-padded, f32)
    wl_ref : (Hp, Op), bl_ref: (1, Op)  final Linear (lane-dense output, f32)
    out_ref: (Bb, Op)      written only on the last time-chunk
    xp_ref : (TC*Bb, 4*Hp) f32 scratch for the hoisted input projection
    h_ref/c_ref: (Bb, Hp)  f32 state carried across the time-chunk grid axis
    """
    blk = pl.program_id(1)                       # time-chunk index
    Bb, Hp = h_ref.shape
    TC = x_ref.shape[0] // Bb
    mm_dtype = whh_ref.dtype

    # h/c must be exactly zero at t=0 of every batch tile: combined with the
    # zero gate-padding columns this keeps padded hidden units at exactly 0.
    @pl.when(blk == 0)
    def _init():
        h_ref[...] = jnp.zeros_like(h_ref)
        c_ref[...] = jnp.zeros_like(c_ref)

    # Hoisted input projection: one (TC*Bb, D) @ (D, 4*Hp) MXU matmul for the
    # whole chunk, bias folded in once (f32 accumulation).
    xp_ref[...] = (jnp.dot(x_ref[...], wih_ref[...],
                           preferred_element_type=jnp.float32) + b_ref[...])

    # Pre-broadcast lengths once; per timestep the mask is then a single
    # vector compare plus one vsel per state.
    len_b = jnp.broadcast_to(len_ref[...], (Bb, Hp))      # int32 (Bb, Hp)
    t0 = blk * TC

    def step(t, carry):
        h, c = carry
        row0 = pl.multiple_of(t * Bb, Bb)                 # sublane-aligned
        gates = xp_ref[pl.ds(row0, Bb), :] + jnp.dot(
            h.astype(mm_dtype), whh_ref[...],
            preferred_element_type=jnp.float32)
        # PyTorch gate order [i, f, g, o]; each slice is a lane-aligned
        # 128-multiple block (Hp is a multiple of 128).
        i_g = jax.nn.sigmoid(gates[:, 0 * Hp:1 * Hp])
        f_g = jax.nn.sigmoid(gates[:, 1 * Hp:2 * Hp])
        g_g = jnp.tanh(gates[:, 2 * Hp:3 * Hp])
        o_g = jax.nn.sigmoid(gates[:, 3 * Hp:4 * Hp])
        c_new = f_g * c + i_g * g_g
        h_new = o_g * jnp.tanh(c_new)
        # pack_padded_sequence semantics: state freezes once t >= length[b].
        valid = len_b > (t0 + t)
        return jnp.where(valid, h_new, h), jnp.where(valid, c_new, c)

    h, c = jax.lax.fori_loop(0, TC, step, (h_ref[...], c_ref[...]),
                             unroll=unroll)
    h_ref[...] = h
    c_ref[...] = c

    @pl.when(blk == pl.num_programs(1) - 1)
    def _final():
        # nn.Dropout is identity at inference; not applied.
        out_ref[...] = (jnp.dot(h, wl_ref[...],
                                preferred_element_type=jnp.float32)
                        + bl_ref[...])


def _round_up(n, m):
    return (n + m - 1) // m * m


def auvi_subnet(x, lengths, params, *, time_chunk=32, batch_block=8,
                unroll=8, matmul_dtype=jnp.bfloat16):
    """x: (B, T, in_size) f32, lengths: (B,) int32 -> (B, out_size) f32."""
    B, T, D = x.shape
    H = params["w_hh"].shape[1]        # w_hh: (4H, H)
    O = params["w_lin"].shape[0]       # w_lin: (O, H)
    f32 = jnp.float32

    Bb = _round_up(max(int(batch_block), 1), 8)   # sublane-aligned batch tile
    Bp = _round_up(max(B, 1), Bb)
    Hp = _round_up(max(H, 1), 128)                # lane-aligned gate blocks
    Op = _round_up(max(O, 1), 128)                # lane-dense output store
    TC = max(8, min(int(time_chunk), _round_up(T, 8)))
    Tp = _round_up(T, TC)
    n_chunks = Tp // TC
    n_btiles = Bp // Bb
    unroll_eff = max(1, min(int(unroll), TC))

    # Single pad/reorder of x (natural feature width D, matmul dtype). For the
    # common single-batch-tile case this is just a time-major zero-pad of x.
    # Row order: ((btile*Tp + t)*Bb + b_in_tile).
    x_pad = jnp.zeros((Bp, Tp, D), f32).at[:B, :T, :].set(x.astype(f32))
    x_rows = (x_pad.reshape(n_btiles, Bb, Tp, D)
                    .transpose(0, 2, 1, 3)
                    .reshape(n_btiles * Tp * Bb, D)
                    .astype(matmul_dtype))

    # Lengths per batch row (padded rows get 0 -> permanently frozen at 0).
    lens = jnp.zeros((Bp, 1), jnp.int32).at[:B, 0].set(
        lengths.astype(jnp.int32))

    # Gate-padded weights: gate g occupies columns [g*Hp, g*Hp + H); padded
    # columns/rows are zero so padded hidden units stay exactly 0.
    def pad_gate_weight(w, K, Kp):                # (4H, K) -> (Kp, 4*Hp)
        wg = w.astype(f32).reshape(4, H, K)
        out = jnp.zeros((4, Hp, Kp), f32).at[:, :H, :K].set(wg)
        return out.transpose(2, 0, 1).reshape(Kp, 4 * Hp)

    wih_t = pad_gate_weight(params["w_ih"], D, D).astype(matmul_dtype)
    whh_t = pad_gate_weight(params["w_hh"], H, Hp).astype(matmul_dtype)
    bg = (params["b_ih"] + params["b_hh"]).astype(f32).reshape(4, H)
    b_pad = jnp.zeros((4, Hp), f32).at[:, :H].set(bg).reshape(1, 4 * Hp)

    wl_t = jnp.zeros((Hp, Op), f32).at[:H, :O].set(
        params["w_lin"].astype(f32).T)
    bl_pad = jnp.zeros((1, Op), f32).at[0, :O].set(params["b_lin"].astype(f32))

    grid_spec = pltpu.PrefetchScalarGridSpec(
        num_scalar_prefetch=0,
        grid=(n_btiles, n_chunks),
        in_specs=[
            # x streamed per (batch tile, time chunk); natural D width.
            pl.BlockSpec((TC * Bb, D), lambda i, j: (i * n_chunks + j, 0)),
            pl.BlockSpec((Bb, 1), lambda i, j: (i, 0)),          # lengths
            pl.BlockSpec((D, 4 * Hp), lambda i, j: (0, 0)),      # W_ih (resident)
            pl.BlockSpec((Hp, 4 * Hp), lambda i, j: (0, 0)),     # W_hh (resident)
            pl.BlockSpec((1, 4 * Hp), lambda i, j: (0, 0)),      # bias
            pl.BlockSpec((Hp, Op), lambda i, j: (0, 0)),         # W_lin
            pl.BlockSpec((1, Op), lambda i, j: (0, 0)),          # b_lin
        ],
        out_specs=pl.BlockSpec((Bb, Op), lambda i, j: (i, 0)),
        scratch_shapes=[pltpu.VMEM((TC * Bb, 4 * Hp), jnp.float32),  # xproj
                        pltpu.VMEM((Bb, Hp), jnp.float32),           # h carry
                        pltpu.VMEM((Bb, Hp), jnp.float32)],          # c carry
    )

    out_pad = pl.pallas_call(
        functools.partial(_lstm_chunk_kernel, unroll=unroll_eff),
        out_shape=jax.ShapeDtypeStruct((Bp, Op), jnp.float32),
        grid_spec=grid_spec,
        compiler_params=pltpu.CompilerParams(
            # batch tiles are independent (v7x megacore); the recurrence runs
            # sequentially over time chunks.
            dimension_semantics=("parallel", "arbitrary"),
            vmem_limit_bytes=32 * 1024 * 1024,      # safe on v5e/v6e/v7x
        ),
    )(x_rows, lens, wih_t, whh_t, b_pad, wl_t, bl_pad)

    return out_pad[:B, :O]


def auvi_reference(x, lengths, params):
    """Pure-JAX reference (PyTorch LSTM + pack_padded + last hidden + Linear)."""
    B, T, _ = x.shape
    H = params["w_hh"].shape[1]
    w_ih, w_hh = params["w_ih"], params["w_hh"]
    b = params["b_ih"] + params["b_hh"]
    h = jnp.zeros((B, H), jnp.float32)
    c = jnp.zeros((B, H), jnp.float32)
    for t in range(T):
        gates = x[:, t, :] @ w_ih.T + h @ w_hh.T + b
        i_g = jax.nn.sigmoid(gates[:, 0 * H:1 * H])
        f_g = jax.nn.sigmoid(gates[:, 1 * H:2 * H])
        g_g = jnp.tanh(gates[:, 2 * H:3 * H])
        o_g = jax.nn.sigmoid(gates[:, 3 * H:4 * H])
        c_new = f_g * c + i_g * g_g
        h_new = o_g * jnp.tanh(c_new)
        valid = (lengths > t).reshape(B, 1)
        h = jnp.where(valid, h_new, h)
        c = jnp.where(valid, c_new, c)
    return h @ params["w_lin"].T + params["b_lin"]


if __name__ == "__main__":
    B, T, D, H, O = 2, 8, 16, 32, 16

    key = jax.random.PRNGKey(0)
    ks = jax.random.split(key, 8)
    s = 1.0 / jnp.sqrt(jnp.float32(H))
    params = {
        "w_ih": jax.random.uniform(ks[0], (4 * H, D), jnp.float32, -s, s),
        "w_hh": jax.random.uniform(ks[1], (4 * H, H), jnp.float32, -s, s),
        "b_ih": jax.random.uniform(ks[2], (4 * H,), jnp.float32, -s, s),
        "b_hh": jax.random.uniform(ks[3], (4 * H,), jnp.float32, -s, s),
        "w_lin": jax.random.uniform(ks[4], (O, H), jnp.float32, -s, s),
        "b_lin": jax.random.uniform(ks[5], (O,), jnp.float32, -s, s),
    }

    x = jax.random.normal(ks[6], (B, T, D), jnp.float32)
    lengths = jnp.array([T, 5], dtype=jnp.int32)   # variable-length sequences

    y_ref = auvi_reference(x, lengths, params)

    # Default path: bf16 MXU operands, f32 accumulation + f32 gate math.
    y = auvi_subnet(x, lengths, params)
    jax.block_until_ready(y)
    assert y.shape == (B, O) and y.dtype == jnp.float32
    assert bool(jnp.all(jnp.isfinite(y)))
    assert bool(jnp.allclose(y, y_ref, rtol=5e-2, atol=5e-2)), (
        f"bf16 path max abs err {float(jnp.max(jnp.abs(y - y_ref)))}")

    # f32-operand path: tight match with the reference semantics.
    y_f32 = auvi_subnet(x, lengths, params, matmul_dtype=jnp.float32)
    jax.block_until_ready(y_f32)
    assert bool(jnp.allclose(y_f32, y_ref, rtol=1e-4, atol=1e-4)), (
        f"f32 path max abs err {float(jnp.max(jnp.abs(y_f32 - y_ref)))}")

    print("KERNEL_OK")
</pallas_src>

<mosaic_0001>
module attributes {stable_mosaic.version = 11 : i64} {
  func.func @_lstm_chunk_kernel(%arg0: i32, %arg1: i32, %arg2: memref<64x16xbf16, #tpu.memory_space<vmem>>, %arg3: memref<8x1xi32, #tpu.memory_space<vmem>>, %arg4: memref<16x512xbf16, #tpu.memory_space<vmem>>, %arg5: memref<128x512xbf16, #tpu.memory_space<vmem>>, %arg6: memref<1x512xf32, #tpu.memory_space<vmem>>, %arg7: memref<128x128xf32, #tpu.memory_space<vmem>>, %arg8: memref<1x128xf32, #tpu.memory_space<vmem>>, %arg9: memref<8x128xf32, #tpu.memory_space<vmem>>, %arg10: memref<64x512xf32, #tpu.memory_space<vmem>>, %arg11: memref<8x128xf32, #tpu.memory_space<vmem>>, %arg12: memref<8x128xf32, #tpu.memory_space<vmem>>) attributes {dimension_semantics = [#tpu.dimension_semantics<parallel>, #tpu.dimension_semantics<arbitrary>], iteration_bounds = array<i64: 1, 1>, scalar_prefetch = 0 : i64, scratch_operands = 3 : i64, tpu.core_type = #tpu.core_type<tc>, window_params = [{transform_indices = @transform_0, window_bounds = array<i64: 64, 16>}, {transform_indices = @transform_1, window_bounds = array<i64: 8, 1>}, {pipeline_mode = #tpu.pipeline_mode<synchronous>, transform_indices = @transform_2, window_bounds = array<i64: 16, 512>}, {pipeline_mode = #tpu.pipeline_mode<synchronous>, transform_indices = @transform_3, window_bounds = array<i64: 128, 512>}, {pipeline_mode = #tpu.pipeline_mode<synchronous>, transform_indices = @transform_4, window_bounds = array<i64: 1, 512>}, {pipeline_mode = #tpu.pipeline_mode<synchronous>, transform_indices = @transform_5, window_bounds = array<i64: 128, 128>}, {pipeline_mode = #tpu.pipeline_mode<synchronous>, transform_indices = @transform_6, window_bounds = array<i64: 1, 128>}, {transform_indices = @transform_7, window_bounds = array<i64: 8, 128>}]} {
    %c0_i32 = arith.constant 0 : i32
    %0 = arith.cmpi eq, %arg1, %c0_i32 : i32
    %1 = arith.extui %0 : i1 to i32
    %c0_i32_0 = arith.constant 0 : i32
    %2 = arith.cmpi ne, %1, %c0_i32_0 : i32
    scf.if %2 {
      %cst_86 = arith.constant 0.000000e+00 : f32
      %325 = vector.broadcast %cst_86 : f32 to vector<8x128xf32>
      %c0_87 = arith.constant 0 : index
      %c0_88 = arith.constant 0 : index
      %326 = vector.load %arg11[%c0_87, %c0_88] : memref<8x128xf32, #tpu.memory_space<vmem>>, vector<8x128xf32>
      tpu.vector_store %arg11[%c0_87, %c0_88], %325 {strides = array<i32>} : memref<8x128xf32, #tpu.memory_space<vmem>>, vector<8x128xf32>,
      %cst_89 = arith.constant 0.000000e+00 : f32
      %327 = vector.broadcast %cst_89 : f32 to vector<8x128xf32>
      %c0_90 = arith.constant 0 : index
      %c0_91 = arith.constant 0 : index
      %328 = vector.load %arg12[%c0_90, %c0_91] : memref<8x128xf32, #tpu.memory_space<vmem>>, vector<8x128xf32>
      tpu.vector_store %arg12[%c0_90, %c0_91], %327 {strides = array<i32>} : memref<8x128xf32, #tpu.memory_space<vmem>>, vector<8x128xf32>,
    } else {
    }
    %c0 = arith.constant 0 : index
    %c0_1 = arith.constant 0 : index
    %3 = vector.load %arg2[%c0, %c0_1] : memref<64x16xbf16, #tpu.memory_space<vmem>>, vector<64x16xbf16>
    %c0_2 = arith.constant 0 : index
    %c0_3 = arith.constant 0 : index
    %4 = vector.load %arg4[%c0_2, %c0_3] : memref<16x512xbf16, #tpu.memory_space<vmem>>, vector<16x512xbf16>
    %cst = arith.constant dense<0.000000e+00> : vector<64x512xf32>
    %5 = tpu.matmul %3, %4, %cst {dimension_numbers = #tpu.dot_dimension_numbers<[1], [0], [0], [1], [0, 0, 1, 1], [], []>} : vector<64x16xbf16>, vector<16x512xbf16>, vector<64x512xf32> -> vector<64x512xf32>
    %c0_4 = arith.constant 0 : index
    %c0_5 = arith.constant 0 : index
    %6 = vector.load %arg6[%c0_4, %c0_5] : memref<1x512xf32, #tpu.memory_space<vmem>>, vector<1x512xf32>
    %7 = vector.broadcast %6 : vector<1x512xf32> to vector<64x512xf32>
    %8 = arith.addf %5, %7 : vector<64x512xf32>
    %c0_6 = arith.constant 0 : index
    %c0_7 = arith.constant 0 : index
    %9 = vector.load %arg10[%c0_6, %c0_7] : memref<64x512xf32, #tpu.memory_space<vmem>>, vector<64x512xf32>
    tpu.vector_store %arg10[%c0_6, %c0_7], %8 {strides = array<i32>} : memref<64x512xf32, #tpu.memory_space<vmem>>, vector<64x512xf32>,
    %c0_8 = arith.constant 0 : index
    %c0_9 = arith.constant 0 : index
    %10 = vector.load %arg3[%c0_8, %c0_9] : memref<8x1xi32, #tpu.memory_space<vmem>>, vector<8x1xi32>
    %11 = vector.shape_cast %10 : vector<8x1xi32> to vector<8x1xi32>
    %12 = vector.broadcast %11 : vector<8x1xi32> to vector<8x128xi32>
    %c8_i32 = arith.constant 8 : i32
    %13 = arith.muli %arg1, %c8_i32 : i32
    %c0_10 = arith.constant 0 : index
    %c0_11 = arith.constant 0 : index
    %14 = vector.load %arg11[%c0_10, %c0_11] : memref<8x128xf32, #tpu.memory_space<vmem>>, vector<8x128xf32>
    %c0_12 = arith.constant 0 : index
    %c0_13 = arith.constant 0 : index
    %15 = vector.load %arg12[%c0_12, %c0_13] : memref<8x128xf32, #tpu.memory_space<vmem>>, vector<8x128xf32>
    %c0_i32_14 = arith.constant 0 : i32
    %c8_i32_15 = arith.constant 8 : i32
    %16 = arith.muli %c0_i32_14, %c8_i32_15 : i32
    %17 = tpu.assume_multiple %16, 8 : i32
    %18 = arith.index_cast %17 : i32 to index
    %c0_16 = arith.constant 0 : index
    %19 = vector.load %arg10[%18, %c0_16] : memref<64x512xf32, #tpu.memory_space<vmem>>, vector<8x512xf32>
    %20 = arith.truncf %14 : vector<8x128xf32> to vector<8x128xbf16>
    %c0_17 = arith.constant 0 : index
    %c0_18 = arith.constant 0 : index
    %21 = vector.load %arg5[%c0_17, %c0_18] : memref<128x512xbf16, #tpu.memory_space<vmem>>, vector<128x512xbf16>
    %cst_19 = arith.constant dense<0.000000e+00> : vector<8x512xf32>
    %22 = tpu.matmul %20, %21, %cst_19 {dimension_numbers = #tpu.dot_dimension_numbers<[1], [0], [0], [1], [0, 0, 1, 1], [], []>} : vector<8x128xbf16>, vector<128x512xbf16>, vector<8x512xf32> -> vector<8x512xf32>
    %23 = arith.addf %19, %22 : vector<8x512xf32>
    %24 = vector.extract_strided_slice %23 {offsets = [0, 0], sizes = [8, 128], strides = [1, 1]} : vector<8x512xf32> to vector<8x128xf32>
    %25 = arith.negf %24 : vector<8x128xf32>
    %26 = math.exp %25 : vector<8x128xf32>
    %cst_20 = arith.constant 1.000000e+00 : f32
    %27 = vector.broadcast %cst_20 : f32 to vector<8x128xf32>
    %28 = arith.addf %27, %26 : vector<8x128xf32>
    %29 = arith.divf %27, %28 : vector<8x128xf32>
    %30 = vector.extract_strided_slice %23 {offsets = [0, 128], sizes = [8, 128], strides = [1, 1]} : vector<8x512xf32> to vector<8x128xf32>
    %31 = arith.negf %30 : vector<8x128xf32>
    %32 = math.exp %31 : vector<8x128xf32>
    %cst_21 = arith.constant 1.000000e+00 : f32
    %33 = vector.broadcast %cst_21 : f32 to vector<8x128xf32>
    %34 = arith.addf %33, %32 : vector<8x128xf32>
    %35 = arith.divf %33, %34 : vector<8x128xf32>
    %36 = vector.extract_strided_slice %23 {offsets = [0, 256], sizes = [8, 128], strides = [1, 1]} : vector<8x512xf32> to vector<8x128xf32>
    %37 = math.tanh %36 : vector<8x128xf32>
    %38 = vector.extract_strided_slice %23 {offsets = [0, 384], sizes = [8, 128], strides = [1, 1]} : vector<8x512xf32> to vector<8x128xf32>
    %39 = arith.negf %38 : vector<8x128xf32>
    %40 = math.exp %39 : vector<8x128xf32>
    %cst_22 = arith.constant 1.000000e+00 : f32
    %41 = vector.broadcast %cst_22 : f32 to vector<8x128xf32>
    %42 = arith.addf %41, %40 : vector<8x128xf32>
    %43 = arith.divf %41, %42 : vector<8x128xf32>
    %44 = arith.mulf %35, %15 : vector<8x128xf32>
    %45 = arith.mulf %29, %37 : vector<8x128xf32>
    %46 = arith.addf %44, %45 : vector<8x128xf32>
    %47 = math.tanh %46 : vector<8x128xf32>
    %48 = arith.mulf %43, %47 : vector<8x128xf32>
    %49 = arith.addi %13, %c0_i32_14 : i32
    %50 = vector.broadcast %49 : i32 to vector<8x128xi32>
    %51 = arith.cmpi sgt, %12, %50 : vector<8x128xi32>
    %52 = arith.select %51, %48, %14 : vector<8x128xi1>, vector<8x128xf32>
    %53 = arith.select %51, %46, %15 : vector<8x128xi1>, vector<8x128xf32>
    %c1_i32 = arith.constant 1 : i32
    %c8_i32_23 = arith.constant 8 : i32
    %54 = arith.muli %c1_i32, %c8_i32_23 : i32
    %55 = tpu.assume_multiple %54, 8 : i32
    %56 = arith.index_cast %55 : i32 to index
    %c0_24 = arith.constant 0 : index
    %57 = vector.load %arg10[%56, %c0_24] : memref<64x512xf32, #tpu.memory_space<vmem>>, vector<8x512xf32>
    %58 = arith.truncf %52 : vector<8x128xf32> to vector<8x128xbf16>
    %c0_25 = arith.constant 0 : index
    %c0_26 = arith.constant 0 : index
    %59 = vector.load %arg5[%c0_25, %c0_26] : memref<128x512xbf16, #tpu.memory_space<vmem>>, vector<128x512xbf16>
    %cst_27 = arith.constant dense<0.000000e+00> : vector<8x512xf32>
    %60 = tpu.matmul %58, %59, %cst_27 {dimension_numbers = #tpu.dot_dimension_numbers<[1], [0], [0], [1], [0, 0, 1, 1], [], []>} : vector<8x128xbf16>, vector<128x512xbf16>, vector<8x512xf32> -> vector<8x512xf32>
    %61 = arith.addf %57, %60 : vector<8x512xf32>
    %62 = vector.extract_strided_slice %61 {offsets = [0, 0], sizes = [8, 128], strides = [1, 1]} : vector<8x512xf32> to vector<8x128xf32>
    %63 = arith.negf %62 : vector<8x128xf32>
    %64 = math.exp %63 : vector<8x128xf32>
    %cst_28 = arith.constant 1.000000e+00 : f32
    %65 = vector.broadcast %cst_28 : f32 to vector<8x128xf32>
    %66 = arith.addf %65, %64 : vector<8x128xf32>
    %67 = arith.divf %65, %66 : vector<8x128xf32>
    %68 = vector.extract_strided_slice %61 {offsets = [0, 128], sizes = [8, 128], strides = [1, 1]} : vector<8x512xf32> to vector<8x128xf32>
    %69 = arith.negf %68 : vector<8x128xf32>
    %70 = math.exp %69 : vector<8x128xf32>
    %cst_29 = arith.constant 1.000000e+00 : f32
    %71 = vector.broadcast %cst_29 : f32 to vector<8x128xf32>
    %72 = arith.addf %71, %70 : vector<8x128xf32>
    %73 = arith.divf %71, %72 : vector<8x128xf32>
    %74 = vector.extract_strided_slice %61 {offsets = [0, 256], sizes = [8, 128], strides = [1, 1]} : vector<8x512xf32> to vector<8x128xf32>
    %75 = math.tanh %74 : vector<8x128xf32>
    %76 = vector.extract_strided_slice %61 {offsets = [0, 384], sizes = [8, 128], strides = [1, 1]} : vector<8x512xf32> to vector<8x128xf32>
    %77 = arith.negf %76 : vector<8x128xf32>
    %78 = math.exp %77 : vector<8x128xf32>
    %cst_30 = arith.constant 1.000000e+00 : f32
    %79 = vector.broadcast %cst_30 : f32 to vector<8x128xf32>
    %80 = arith.addf %79, %78 : vector<8x128xf32>
    %81 = arith.divf %79, %80 : vector<8x128xf32>
    %82 = arith.mulf %73, %53 : vector<8x128xf32>
    %83 = arith.mulf %67, %75 : vector<8x128xf32>
    %84 = arith.addf %82, %83 : vector<8x128xf32>
    %85 = math.tanh %84 : vector<8x128xf32>
    %86 = arith.mulf %81, %85 : vector<8x128xf32>
    %87 = arith.addi %13, %c1_i32 : i32
    %88 = vector.broadcast %87 : i32 to vector<8x128xi32>
    %89 = arith.cmpi sgt, %12, %88 : vector<8x128xi32>
    %90 = arith.select %89, %86, %52 : vector<8x128xi1>, vector<8x128xf32>
    %91 = arith.select %89, %84, %53 : vector<8x128xi1>, vector<8x128xf32>
    %c2_i32 = arith.constant 2 : i32
    %c8_i32_31 = arith.constant 8 : i32
    %92 = arith.muli %c2_i32, %c8_i32_31 : i32
    %93 = tpu.assume_multiple %92, 8 : i32
    %94 = arith.index_cast %93 : i32 to index
    %c0_32 = arith.constant 0 : index
    %95 = vector.load %arg10[%94, %c0_32] : memref<64x512xf32, #tpu.memory_space<vmem>>, vector<8x512xf32>
    %96 = arith.truncf %90 : vector<8x128xf32> to vector<8x128xbf16>
    %c0_33 = arith.constant 0 : index
    %c0_34 = arith.constant 0 : index
    %97 = vector.load %arg5[%c0_33, %c0_34] : memref<128x512xbf16, #tpu.memory_space<vmem>>, vector<128x512xbf16>
    %cst_35 = arith.constant dense<0.000000e+00> : vector<8x512xf32>
    %98 = tpu.matmul %96, %97, %cst_35 {dimension_numbers = #tpu.dot_dimension_numbers<[1], [0], [0], [1], [0, 0, 1, 1], [], []>} : vector<8x128xbf16>, vector<128x512xbf16>, vector<8x512xf32> -> vector<8x512xf32>
    %99 = arith.addf %95, %98 : vector<8x512xf32>
    %100 = vector.extract_strided_slice %99 {offsets = [0, 0], sizes = [8, 128], strides = [1, 1]} : vector<8x512xf32> to vector<8x128xf32>
    %101 = arith.negf %100 : vector<8x128xf32>
    %102 = math.exp %101 : vector<8x128xf32>
    %cst_36 = arith.constant 1.000000e+00 : f32
    %103 = vector.broadcast %cst_36 : f32 to vector<8x128xf32>
    %104 = arith.addf %103, %102 : vector<8x128xf32>
    %105 = arith.divf %103, %104 : vector<8x128xf32>
    %106 = vector.extract_strided_slice %99 {offsets = [0, 128], sizes = [8, 128], strides = [1, 1]} : vector<8x512xf32> to vector<8x128xf32>
    %107 = arith.negf %106 : vector<8x128xf32>
    %108 = math.exp %107 : vector<8x128xf32>
    %cst_37 = arith.constant 1.000000e+00 : f32
    %109 = vector.broadcast %cst_37 : f32 to vector<8x128xf32>
    %110 = arith.addf %109, %108 : vector<8x128xf32>
    %111 = arith.divf %109, %110 : vector<8x128xf32>
    %112 = vector.extract_strided_slice %99 {offsets = [0, 256], sizes = [8, 128], strides = [1, 1]} : vector<8x512xf32> to vector<8x128xf32>
    %113 = math.tanh %112 : vector<8x128xf32>
    %114 = vector.extract_strided_slice %99 {offsets = [0, 384], sizes = [8, 128], strides = [1, 1]} : vector<8x512xf32> to vector<8x128xf32>
    %115 = arith.negf %114 : vector<8x128xf32>
    %116 = math.exp %115 : vector<8x128xf32>
    %cst_38 = arith.constant 1.000000e+00 : f32
    %117 = vector.broadcast %cst_38 : f32 to vector<8x128xf32>
    %118 = arith.addf %117, %116 : vector<8x128xf32>
    %119 = arith.divf %117, %118 : vector<8x128xf32>
    %120 = arith.mulf %111, %91 : vector<8x128xf32>
    %121 = arith.mulf %105, %113 : vector<8x128xf32>
    %122 = arith.addf %120, %121 : vector<8x128xf32>
    %123 = math.tanh %122 : vector<8x128xf32>
    %124 = arith.mulf %119, %123 : vector<8x128xf32>
    %125 = arith.addi %13, %c2_i32 : i32
    %126 = vector.broadcast %125 : i32 to vector<8x128xi32>
    %127 = arith.cmpi sgt, %12, %126 : vector<8x128xi32>
    %128 = arith.select %127, %124, %90 : vector<8x128xi1>, vector<8x128xf32>
    %129 = arith.select %127, %122, %91 : vector<8x128xi1>, vector<8x128xf32>
    %c3_i32 = arith.constant 3 : i32
    %c8_i32_39 = arith.constant 8 : i32
    %130 = arith.muli %c3_i32, %c8_i32_39 : i32
    %131 = tpu.assume_multiple %130, 8 : i32
    %132 = arith.index_cast %131 : i32 to index
    %c0_40 = arith.constant 0 : index
    %133 = vector.load %arg10[%132, %c0_40] : memref<64x512xf32, #tpu.memory_space<vmem>>, vector<8x512xf32>
    %134 = arith.truncf %128 : vector<8x128xf32> to vector<8x128xbf16>
    %c0_41 = arith.constant 0 : index
    %c0_42 = arith.constant 0 : index
    %135 = vector.load %arg5[%c0_41, %c0_42] : memref<128x512xbf16, #tpu.memory_space<vmem>>, vector<128x512xbf16>
    %cst_43 = arith.constant dense<0.000000e+00> : vector<8x512xf32>
    %136 = tpu.matmul %134, %135, %cst_43 {dimension_numbers = #tpu.dot_dimension_numbers<[1], [0], [0], [1], [0, 0, 1, 1], [], []>} : vector<8x128xbf16>, vector<128x512xbf16>, vector<8x512xf32> -> vector<8x512xf32>
    %137 = arith.addf %133, %136 : vector<8x512xf32>
    %138 = vector.extract_strided_slice %137 {offsets = [0, 0], sizes = [8, 128], strides = [1, 1]} : vector<8x512xf32> to vector<8x128xf32>
    %139 = arith.negf %138 : vector<8x128xf32>
    %140 = math.exp %139 : vector<8x128xf32>
    %cst_44 = arith.constant 1.000000e+00 : f32
    %141 = vector.broadcast %cst_44 : f32 to vector<8x128xf32>
    %142 = arith.addf %141, %140 : vector<8x128xf32>
    %143 = arith.divf %141, %142 : vector<8x128xf32>
    %144 = vector.extract_strided_slice %137 {offsets = [0, 128], sizes = [8, 128], strides = [1, 1]} : vector<8x512xf32> to vector<8x128xf32>
    %145 = arith.negf %144 : vector<8x128xf32>
    %146 = math.exp %145 : vector<8x128xf32>
    %cst_45 = arith.constant 1.000000e+00 : f32
    %147 = vector.broadcast %cst_45 : f32 to vector<8x128xf32>
    %148 = arith.addf %147, %146 : vector<8x128xf32>
    %149 = arith.divf %147, %148 : vector<8x128xf32>
    %150 = vector.extract_strided_slice %137 {offsets = [0, 256], sizes = [8, 128], strides = [1, 1]} : vector<8x512xf32> to vector<8x128xf32>
    %151 = math.tanh %150 : vector<8x128xf32>
    %152 = vector.extract_strided_slice %137 {offsets = [0, 384], sizes = [8, 128], strides = [1, 1]} : vector<8x512xf32> to vector<8x128xf32>
    %153 = arith.negf %152 : vector<8x128xf32>
    %154 = math.exp %153 : vector<8x128xf32>
    %cst_46 = arith.constant 1.000000e+00 : f32
    %155 = vector.broadcast %cst_46 : f32 to vector<8x128xf32>
    %156 = arith.addf %155, %154 : vector<8x128xf32>
    %157 = arith.divf %155, %156 : vector<8x128xf32>
    %158 = arith.mulf %149, %129 : vector<8x128xf32>
    %159 = arith.mulf %143, %151 : vector<8x128xf32>
    %160 = arith.addf %158, %159 : vector<8x128xf32>
    %161 = math.tanh %160 : vector<8x128xf32>
    %162 = arith.mulf %157, %161 : vector<8x128xf32>
    %163 = arith.addi %13, %c3_i32 : i32
    %164 = vector.broadcast %163 : i32 to vector<8x128xi32>
    %165 = arith.cmpi sgt, %12, %164 : vector<8x128xi32>
    %166 = arith.select %165, %162, %128 : vector<8x128xi1>, vector<8x128xf32>
    %167 = arith.select %165, %160, %129 : vector<8x128xi1>, vector<8x128xf32>
    %c4_i32 = arith.constant 4 : i32
    %c8_i32_47 = arith.constant 8 : i32
    %168 = arith.muli %c4_i32, %c8_i32_47 : i32
    %169 = tpu.assume_multiple %168, 8 : i32
    %170 = arith.index_cast %169 : i32 to index
    %c0_48 = arith.constant 0 : index
    %171 = vector.load %arg10[%170, %c0_48] : memref<64x512xf32, #tpu.memory_space<vmem>>, vector<8x512xf32>
    %172 = arith.truncf %166 : vector<8x128xf32> to vector<8x128xbf16>
    %c0_49 = arith.constant 0 : index
    %c0_50 = arith.constant 0 : index
    %173 = vector.load %arg5[%c0_49, %c0_50] : memref<128x512xbf16, #tpu.memory_space<vmem>>, vector<128x512xbf16>
    %cst_51 = arith.constant dense<0.000000e+00> : vector<8x512xf32>
    %174 = tpu.matmul %172, %173, %cst_51 {dimension_numbers = #tpu.dot_dimension_numbers<[1], [0], [0], [1], [0, 0, 1, 1], [], []>} : vector<8x128xbf16>, vector<128x512xbf16>, vector<8x512xf32> -> vector<8x512xf32>
    %175 = arith.addf %171, %174 : vector<8x512xf32>
    %176 = vector.extract_strided_slice %175 {offsets = [0, 0], sizes = [8, 128], strides = [1, 1]} : vector<8x512xf32> to vector<8x128xf32>
    %177 = arith.negf %176 : vector<8x128xf32>
    %178 = math.exp %177 : vector<8x128xf32>
    %cst_52 = arith.constant 1.000000e+00 : f32
    %179 = vector.broadcast %cst_52 : f32 to vector<8x128xf32>
    %180 = arith.addf %179, %178 : vector<8x128xf32>
    %181 = arith.divf %179, %180 : vector<8x128xf32>
    %182 = vector.extract_strided_slice %175 {offsets = [0, 128], sizes = [8, 128], strides = [1, 1]} : vector<8x512xf32> to vector<8x128xf32>
    %183 = arith.negf %182 : vector<8x128xf32>
    %184 = math.exp %183 : vector<8x128xf32>
    %cst_53 = arith.constant 1.000000e+00 : f32
    %185 = vector.broadcast %cst_53 : f32 to vector<8x128xf32>
    %186 = arith.addf %185, %184 : vector<8x128xf32>
    %187 = arith.divf %185, %186 : vector<8x128xf32>
    %188 = vector.extract_strided_slice %175 {offsets = [0, 256], sizes = [8, 128], strides = [1, 1]} : vector<8x512xf32> to vector<8x128xf32>
    %189 = math.tanh %188 : vector<8x128xf32>
    %190 = vector.extract_strided_slice %175 {offsets = [0, 384], sizes = [8, 128], strides = [1, 1]} : vector<8x512xf32> to vector<8x128xf32>
    %191 = arith.negf %190 : vector<8x128xf32>
    %192 = math.exp %191 : vector<8x128xf32>
    %cst_54 = arith.constant 1.000000e+00 : f32
    %193 = vector.broadcast %cst_54 : f32 to vector<8x128xf32>
    %194 = arith.addf %193, %192 : vector<8x128xf32>
    %195 = arith.divf %193, %194 : vector<8x128xf32>
    %196 = arith.mulf %187, %167 : vector<8x128xf32>
    %197 = arith.mulf %181, %189 : vector<8x128xf32>
    %198 = arith.addf %196, %197 : vector<8x128xf32>
    %199 = math.tanh %198 : vector<8x128xf32>
    %200 = arith.mulf %195, %199 : vector<8x128xf32>
    %201 = arith.addi %13, %c4_i32 : i32
    %202 = vector.broadcast %201 : i32 to vector<8x128xi32>
    %203 = arith.cmpi sgt, %12, %202 : vector<8x128xi32>
    %204 = arith.select %203, %200, %166 : vector<8x128xi1>, vector<8x128xf32>
    %205 = arith.select %203, %198, %167 : vector<8x128xi1>, vector<8x128xf32>
    %c5_i32 = arith.constant 5 : i32
    %c8_i32_55 = arith.constant 8 : i32
    %206 = arith.muli %c5_i32, %c8_i32_55 : i32
    %207 = tpu.assume_multiple %206, 8 : i32
    %208 = arith.index_cast %207 : i32 to index
    %c0_56 = arith.constant 0 : index
    %209 = vector.load %arg10[%208, %c0_56] : memref<64x512xf32, #tpu.memory_space<vmem>>, vector<8x512xf32>
    %210 = arith.truncf %204 : vector<8x128xf32> to vector<8x128xbf16>
    %c0_57 = arith.constant 0 : index
    %c0_58 = arith.constant 0 : index
    %211 = vector.load %arg5[%c0_57, %c0_58] : memref<128x512xbf16, #tpu.memory_space<vmem>>, vector<128x512xbf16>
    %cst_59 = arith.constant dense<0.000000e+00> : vector<8x512xf32>
    %212 = tpu.matmul %210, %211, %cst_59 {dimension_numbers = #tpu.dot_dimension_numbers<[1], [0], [0], [1], [0, 0, 1, 1], [], []>} : vector<8x128xbf16>, vector<128x512xbf16>, vector<8x512xf32> -> vector<8x512xf32>
    %213 = arith.addf %209, %212 : vector<8x512xf32>
    %214 = vector.extract_strided_slice %213 {offsets = [0, 0], sizes = [8, 128], strides = [1, 1]} : vector<8x512xf32> to vector<8x128xf32>
    %215 = arith.negf %214 : vector<8x128xf32>
    %216 = math.exp %215 : vector<8x128xf32>
    %cst_60 = arith.constant 1.000000e+00 : f32
    %217 = vector.broadcast %cst_60 : f32 to vector<8x128xf32>
    %218 = arith.addf %217, %216 : vector<8x128xf32>
    %219 = arith.divf %217, %218 : vector<8x128xf32>
    %220 = vector.extract_strided_slice %213 {offsets = [0, 128], sizes = [8, 128], strides = [1, 1]} : vector<8x512xf32> to vector<8x128xf32>
    %221 = arith.negf %220 : vector<8x128xf32>
    %222 = math.exp %221 : vector<8x128xf32>
    %cst_61 = arith.constant 1.000000e+00 : f32
    %223 = vector.broadcast %cst_61 : f32 to vector<8x128xf32>
    %224 = arith.addf %223, %222 : vector<8x128xf32>
    %225 = arith.divf %223, %224 : vector<8x128xf32>
    %226 = vector.extract_strided_slice %213 {offsets = [0, 256], sizes = [8, 128], strides = [1, 1]} : vector<8x512xf32> to vector<8x128xf32>
    %227 = math.tanh %226 : vector<8x128xf32>
    %228 = vector.extract_strided_slice %213 {offsets = [0, 384], sizes = [8, 128], strides = [1, 1]} : vector<8x512xf32> to vector<8x128xf32>
    %229 = arith.negf %228 : vector<8x128xf32>
    %230 = math.exp %229 : vector<8x128xf32>
    %cst_62 = arith.constant 1.000000e+00 : f32
    %231 = vector.broadcast %cst_62 : f32 to vector<8x128xf32>
    %232 = arith.addf %231, %230 : vector<8x128xf32>
    %233 = arith.divf %231, %232 : vector<8x128xf32>
    %234 = arith.mulf %225, %205 : vector<8x128xf32>
    %235 = arith.mulf %219, %227 : vector<8x128xf32>
    %236 = arith.addf %234, %235 : vector<8x128xf32>
    %237 = math.tanh %236 : vector<8x128xf32>
    %238 = arith.mulf %233, %237 : vector<8x128xf32>
    %239 = arith.addi %13, %c5_i32 : i32
    %240 = vector.broadcast %239 : i32 to vector<8x128xi32>
    %241 = arith.cmpi sgt, %12, %240 : vector<8x128xi32>
    %242 = arith.select %241, %238, %204 : vector<8x128xi1>, vector<8x128xf32>
    %243 = arith.select %241, %236, %205 : vector<8x128xi1>, vector<8x128xf32>
    %c6_i32 = arith.constant 6 : i32
    %c8_i32_63 = arith.constant 8 : i32
    %244 = arith.muli %c6_i32, %c8_i32_63 : i32
    %245 = tpu.assume_multiple %244, 8 : i32
    %246 = arith.index_cast %245 : i32 to index
    %c0_64 = arith.constant 0 : index
    %247 = vector.load %arg10[%246, %c0_64] : memref<64x512xf32, #tpu.memory_space<vmem>>, vector<8x512xf32>
    %248 = arith.truncf %242 : vector<8x128xf32> to vector<8x128xbf16>
    %c0_65 = arith.constant 0 : index
    %c0_66 = arith.constant 0 : index
    %249 = vector.load %arg5[%c0_65, %c0_66] : memref<128x512xbf16, #tpu.memory_space<vmem>>, vector<128x512xbf16>
    %cst_67 = arith.constant dense<0.000000e+00> : vector<8x512xf32>
    %250 = tpu.matmul %248, %249, %cst_67 {dimension_numbers = #tpu.dot_dimension_numbers<[1], [0], [0], [1], [0, 0, 1, 1], [], []>} : vector<8x128xbf16>, vector<128x512xbf16>, vector<8x512xf32> -> vector<8x512xf32>
    %251 = arith.addf %247, %250 : vector<8x512xf32>
    %252 = vector.extract_strided_slice %251 {offsets = [0, 0], sizes = [8, 128], strides = [1, 1]} : vector<8x512xf32> to vector<8x128xf32>
    %253 = arith.negf %252 : vector<8x128xf32>
    %254 = math.exp %253 : vector<8x128xf32>
    %cst_68 = arith.constant 1.000000e+00 : f32
    %255 = vector.broadcast %cst_68 : f32 to vector<8x128xf32>
    %256 = arith.addf %255, %254 : vector<8x128xf32>
    %257 = arith.divf %255, %256 : vector<8x128xf32>
    %258 = vector.extract_strided_slice %251 {offsets = [0, 128], sizes = [8, 128], strides = [1, 1]} : vector<8x512xf32> to vector<8x128xf32>
    %259 = arith.negf %258 : vector<8x128xf32>
    %260 = math.exp %259 : vector<8x128xf32>
    %cst_69 = arith.constant 1.000000e+00 : f32
    %261 = vector.broadcast %cst_69 : f32 to vector<8x128xf32>
    %262 = arith.addf %261, %260 : vector<8x128xf32>
    %263 = arith.divf %261, %262 : vector<8x128xf32>
    %264 = vector.extract_strided_slice %251 {offsets = [0, 256], sizes = [8, 128], strides = [1, 1]} : vector<8x512xf32> to vector<8x128xf32>
    %265 = math.tanh %264 : vector<8x128xf32>
    %266 = vector.extract_strided_slice %251 {offsets = [0, 384], sizes = [8, 128], strides = [1, 1]} : vector<8x512xf32> to vector<8x128xf32>
    %267 = arith.negf %266 : vector<8x128xf32>
    %268 = math.exp %267 : vector<8x128xf32>
    %cst_70 = arith.constant 1.000000e+00 : f32
    %269 = vector.broadcast %cst_70 : f32 to vector<8x128xf32>
    %270 = arith.addf %269, %268 : vector<8x128xf32>
    %271 = arith.divf %269, %270 : vector<8x128xf32>
    %272 = arith.mulf %263, %243 : vector<8x128xf32>
    %273 = arith.mulf %257, %265 : vector<8x128xf32>
    %274 = arith.addf %272, %273 : vector<8x128xf32>
    %275 = math.tanh %274 : vector<8x128xf32>
    %276 = arith.mulf %271, %275 : vector<8x128xf32>
    %277 = arith.addi %13, %c6_i32 : i32
    %278 = vector.broadcast %277 : i32 to vector<8x128xi32>
    %279 = arith.cmpi sgt, %12, %278 : vector<8x128xi32>
    %280 = arith.select %279, %276, %242 : vector<8x128xi1>, vector<8x128xf32>
    %281 = arith.select %279, %274, %243 : vector<8x128xi1>, vector<8x128xf32>
    %c7_i32 = arith.constant 7 : i32
    %c8_i32_71 = arith.constant 8 : i32
    %282 = arith.muli %c7_i32, %c8_i32_71 : i32
    %283 = tpu.assume_multiple %282, 8 : i32
    %284 = arith.index_cast %283 : i32 to index
    %c0_72 = arith.constant 0 : index
    %285 = vector.load %arg10[%284, %c0_72] : memref<64x512xf32, #tpu.memory_space<vmem>>, vector<8x512xf32>
    %286 = arith.truncf %280 : vector<8x128xf32> to vector<8x128xbf16>
    %c0_73 = arith.constant 0 : index
    %c0_74 = arith.constant 0 : index
    %287 = vector.load %arg5[%c0_73, %c0_74] : memref<128x512xbf16, #tpu.memory_space<vmem>>, vector<128x512xbf16>
    %cst_75 = arith.constant dense<0.000000e+00> : vector<8x512xf32>
    %288 = tpu.matmul %286, %287, %cst_75 {dimension_numbers = #tpu.dot_dimension_numbers<[1], [0], [0], [1], [0, 0, 1, 1], [], []>} : vector<8x128xbf16>, vector<128x512xbf16>, vector<8x512xf32> -> vector<8x512xf32>
    %289 = arith.addf %285, %288 : vector<8x512xf32>
    %290 = vector.extract_strided_slice %289 {offsets = [0, 0], sizes = [8, 128], strides = [1, 1]} : vector<8x512xf32> to vector<8x128xf32>
    %291 = arith.negf %290 : vector<8x128xf32>
    %292 = math.exp %291 : vector<8x128xf32>
    %cst_76 = arith.constant 1.000000e+00 : f32
    %293 = vector.broadcast %cst_76 : f32 to vector<8x128xf32>
    %294 = arith.addf %293, %292 : vector<8x128xf32>
    %295 = arith.divf %293, %294 : vector<8x128xf32>
    %296 = vector.extract_strided_slice %289 {offsets = [0, 128], sizes = [8, 128], strides = [1, 1]} : vector<8x512xf32> to vector<8x128xf32>
    %297 = arith.negf %296 : vector<8x128xf32>
    %298 = math.exp %297 : vector<8x128xf32>
    %cst_77 = arith.constant 1.000000e+00 : f32
    %299 = vector.broadcast %cst_77 : f32 to vector<8x128xf32>
    %300 = arith.addf %299, %298 : vector<8x128xf32>
    %301 = arith.divf %299, %300 : vector<8x128xf32>
    %302 = vector.extract_strided_slice %289 {offsets = [0, 256], sizes = [8, 128], strides = [1, 1]} : vector<8x512xf32> to vector<8x128xf32>
    %303 = math.tanh %302 : vector<8x128xf32>
    %304 = vector.extract_strided_slice %289 {offsets = [0, 384], sizes = [8, 128], strides = [1, 1]} : vector<8x512xf32> to vector<8x128xf32>
    %305 = arith.negf %304 : vector<8x128xf32>
    %306 = math.exp %305 : vector<8x128xf32>
    %cst_78 = arith.constant 1.000000e+00 : f32
    %307 = vector.broadcast %cst_78 : f32 to vector<8x128xf32>
    %308 = arith.addf %307, %306 : vector<8x128xf32>
    %309 = arith.divf %307, %308 : vector<8x128xf32>
    %310 = arith.mulf %301, %281 : vector<8x128xf32>
    %311 = arith.mulf %295, %303 : vector<8x128xf32>
    %312 = arith.addf %310, %311 : vector<8x128xf32>
    %313 = math.tanh %312 : vector<8x128xf32>
    %314 = arith.mulf %309, %313 : vector<8x128xf32>
    %315 = arith.addi %13, %c7_i32 : i32
    %316 = vector.broadcast %315 : i32 to vector<8x128xi32>
    %317 = arith.cmpi sgt, %12, %316 : vector<8x128xi32>
    %318 = arith.select %317, %314, %280 : vector<8x128xi1>, vector<8x128xf32>
    %319 = arith.select %317, %312, %281 : vector<8x128xi1>, vector<8x128xf32>
    %c8_i32_79 = arith.constant 8 : i32
    %c0_80 = arith.constant 0 : index
    %c0_81 = arith.constant 0 : index
    %320 = vector.load %arg11[%c0_80, %c0_81] : memref<8x128xf32, #tpu.memory_space<vmem>>, vector<8x128xf32>
    tpu.vector_store %arg11[%c0_80, %c0_81], %318 {strides = array<i32>} : memref<8x128xf32, #tpu.memory_space<vmem>>, vector<8x128xf32>,
    %c0_82 = arith.constant 0 : index
    %c0_83 = arith.constant 0 : index
    %321 = vector.load %arg12[%c0_82, %c0_83] : memref<8x128xf32, #tpu.memory_space<vmem>>, vector<8x128xf32>
    tpu.vector_store %arg12[%c0_82, %c0_83], %319 {strides = array<i32>} : memref<8x128xf32, #tpu.memory_space<vmem>>, vector<8x128xf32>,
    %c0_i32_84 = arith.constant 0 : i32
    %322 = arith.cmpi eq, %arg1, %c0_i32_84 : i32
    %323 = arith.extui %322 : i1 to i32
    %c0_i32_85 = arith.constant 0 : i32
    %324 = arith.cmpi ne, %323, %c0_i32_85 : i32
    scf.if %324 {
      %c0_86 = arith.constant 0 : index
      %c0_87 = arith.constant 0 : index
      %325 = vector.load %arg7[%c0_86, %c0_87] : memref<128x128xf32, #tpu.memory_space<vmem>>, vector<128x128xf32>
      %cst_88 = arith.constant dense<0.000000e+00> : vector<8x128xf32>
      %326 = tpu.matmul %318, %325, %cst_88 {dimension_numbers = #tpu.dot_dimension_numbers<[1], [0], [0], [1], [0, 0, 1, 1], [], []>} : vector<8x128xf32>, vector<128x128xf32>, vector<8x128xf32> -> vector<8x128xf32>
      %c0_89 = arith.constant 0 : index
      %c0_90 = arith.constant 0 : index
      %327 = vector.load %arg8[%c0_89, %c0_90] : memref<1x128xf32, #tpu.memory_space<vmem>>, vector<1x128xf32>
      %328 = vector.broadcast %327 : vector<1x128xf32> to vector<8x128xf32>
      %329 = arith.addf %326, %328 : vector<8x128xf32>
      %c0_91 = arith.constant 0 : index
      %c0_92 = arith.constant 0 : index
      %330 = vector.load %arg9[%c0_91, %c0_92] : memref<8x128xf32, #tpu.memory_space<vmem>>, vector<8x128xf32>
      tpu.vector_store %arg9[%c0_91, %c0_92], %329 {strides = array<i32>} : memref<8x128xf32, #tpu.memory_space<vmem>>, vector<8x128xf32>,
    } else {
    }
    return
  }
  func.func @transform_0(%arg0: i32, %arg1: i32) -> (i32, i32) {
    %c1_i32 = arith.constant 1 : i32
    %0 = arith.muli %arg0, %c1_i32 : i32
    %1 = arith.addi %0, %arg1 : i32
    %c0_i32 = arith.constant 0 : i32
    %c0_i32_0 = arith.constant 0 : i32
    return %1, %c0_i32 : i32, i32
  }
  func.func @transform_1(%arg0: i32, %arg1: i32) -> (i32, i32) {
    %c0_i32 = arith.constant 0 : i32
    %c0_i32_0 = arith.constant 0 : i32
    return %arg0, %c0_i32 : i32, i32
  }
  func.func @transform_2(%arg0: i32, %arg1: i32) -> (i32, i32) {
    %c0_i32 = arith.constant 0 : i32
    %c0_i32_0 = arith.constant 0 : i32
    %c0_i32_1 = arith.constant 0 : i32
    return %c0_i32, %c0_i32_0 : i32, i32
  }
  func.func @transform_3(%arg0: i32, %arg1: i32) -> (i32, i32) {
    %c0_i32 = arith.constant 0 : i32
    %c0_i32_0 = arith.constant 0 : i32
    %c0_i32_1 = arith.constant 0 : i32
    return %c0_i32, %c0_i32_0 : i32, i32
  }
  func.func @transform_4(%arg0: i32, %arg1: i32) -> (i32, i32) {
    %c0_i32 = arith.constant 0 : i32
    %c0_i32_0 = arith.constant 0 : i32
    %c0_i32_1 = arith.constant 0 : i32
    return %c0_i32, %c0_i32_0 : i32, i32
  }
  func.func @transform_5(%arg0: i32, %arg1: i32) -> (i32, i32) {
    %c0_i32 = arith.constant 0 : i32
    %c0_i32_0 = arith.constant 0 : i32
    %c0_i32_1 = arith.constant 0 : i32
    return %c0_i32, %c0_i32_0 : i32, i32
  }
  func.func @transform_6(%arg0: i32, %arg1: i32) -> (i32, i32) {
    %c0_i32 = arith.constant 0 : i32
    %c0_i32_0 = arith.constant 0 : i32
    %c0_i32_1 = arith.constant 0 : i32
    return %c0_i32, %c0_i32_0 : i32, i32
  }
  func.func @transform_7(%arg0: i32, %arg1: i32) -> (i32, i32) {
    %c0_i32 = arith.constant 0 : i32
    %c0_i32_0 = arith.constant 0 : i32
    return %arg0, %c0_i32 : i32, i32
  }
}

</mosaic_0001>

<bundles_post_ra>
// kernel: tpu_custom_call.1
= control target key start
LH: loop header
LB: loop body
LE: loop exit
PB: predicated region body
PF: predicated region fallthrough
CT: control target
= control target key end

     0   :  { %12 = vsyncpa [#allocation6], 0  ;;  %s2779_s0 = inlined_call_operand.vmem [shape: bf16[64,16], index: 0, kind: input, shape index: {}]   ;;  %s2780_s1 = inlined_call_operand.vmem [shape: s32[8,1], index: 1, kind: input, shape index: {}]   ;;  %s2781_s2 = inlined_call_operand.vmem [shape: bf16[16,512], index: 2, kind: input, shape index: {}]   ;;  %s2782_s3 = inlined_call_operand.hbm [shape: bf16[128,512], index: 3, kind: input, shape index: {}]   ;;  %s2783_s4 = inlined_call_operand.vmem [shape: f32[1,512], index: 4, kind: input, shape index: {}]   ;;  %s2784_s5 = inlined_call_operand.hbm [shape: f32[128,128], index: 5, kind: input, shape index: {}]   ;;  %s2785_s6 = inlined_call_operand.vmem [shape: f32[1,128], index: 6, kind: input, shape index: {}]   ;;  %s2786_s7 = inlined_call_operand.hbm [shape: f32[8,128], index: 7, kind: output, shape index: {}]  }
   0x1   :  { %13 = vsyncpa [#allocation9], 0 }
   0x2   :  { %14 = vsyncpa [#allocation7], 0  ;;  %s33_s26 = sshll.u32 %s2782_s3, 4  ;;  %s2112_s27 = smov [#allocation5]   ;;  %s34_s26 = int_to_ptr.hbm [resolvable:$true] %s33_s26 }
   0x3   :  { %s35_s28 = sshll.u32 %s2112_s27, 4  ;;  %s48_s8 = sshll.u32 %s2784_s5, 4  ;;  %s36_s28 = int_to_ptr.vmem [resolvable:$true] %s35_s28  ;;  %s49_s8 = int_to_ptr.hbm [resolvable:$true] %s48_s8 }
   0x4   :  { %s2113_s9 = smov 256   ;;  %s2114_s10 = smov 16  }
   0x5   :  { %41 = dma.hbm_to_vmem [thread:$0]  %s34_s26, 4096, %s36_s28, [#allocation6], %s2113_s9, %s2113_s9, %s2114_s10  }
   0x6   :  { %s2115_s11 = smov [#allocation8]   ;;  %s2116_s13 = smov 128  }
   0x7   :  { %s50_s12 = sshll.u32 %s2115_s11, 4  ;;  %s2117_s14 = smov 8   ;;  %s51_s12 = int_to_ptr.vmem [resolvable:$true] %s50_s12 }
   0x8   :  { %56 = dma.hbm_to_vmem [thread:$0]  %s49_s8, 2048, %s51_s12, [#allocation9], %s2116_s13, %s2116_s13, %s2117_s14  }
   0x9   :  { %2106 = dma.done.wait [#allocation6], 4096  }
   0xa   :  { %2107 = vsyncadd [#allocation6], 4294963200 }
   0xb   :  { %2108 = dma.done.wait [#allocation9], 2048  }
   0xc   :  { %2109 = vsyncadd [#allocation9], 4294965248  ;;  %v1660_v0 = vld [vmem:[%s2781_s2] sm:$0xf]  ;;  %v1848_v1 = vld [vmem:[%s2781_s2 + $0xc] sm:$0xf0] }
   0xd   :  { %v1668_v2 = vld [vmem:[%s2781_s2 + $0x8] sm:$0xf]  ;;  %v1661_v3 = vor.u32 %v1848_v1, %v1660_v0  ;;  %v1849_v4 = vld [vmem:[%s2781_s2 + $0x14] sm:$0xf0]  ;;  %v1847_v5 = vld [vmem:[%s2781_s2 + $0xc] sm:$0xf] }
   0xe   :  { %v1670_v6 = vld [vmem:[%s2781_s2 + $0x18] sm:$0xf0]  ;;  %v1669_v7 = vor.u32 %v1849_v4, %v1668_v2  ;;  %v2188_v9 = vld [vmem:[%s2779_s0] sm:$0xff]  ;;  %vm150_vm0 = vcmask 130048   ;;  %v1662_v12 = vld [vmem:[%s2781_s2 + $0x10] sm:$0xf0] }
   0xf   :  { %v1673_v8 = vor.u32 %v1847_v5, %v1670_v6  ;;  %v2193_v10 = vld [vmem:[%s2779_s0 + $0x18] sm:$0xff]  ;;  %v1846_v11 = vld [vmem:[%s2781_s2 + $0x4] sm:$0xf]  ;;  %170 = vmatpush.bf16.msra.mxu0 %v1661_v3  ;;  %1894 = vmatpush.bf16.msra.mxu1 %v1661_v3  ;;  %v1806_v15 = vld [vmem:[#allocation5 + $0xf0] sm:$0xf0]  ;;  %s2120_s15 = smov [#allocation10]  }
  0x10   :  { %v1878_v13 = vld [vmem:[#allocation5 + $0xe4] sm:$0xf]  ;;  %228 = vmatpush.bf16.msra.mxu2 %v1669_v7  ;;  %v1665_v14 = vor.u32 %v1846_v11, %v1662_v12  ;;  %v1804_v16 = vld [vmem:[#allocation5 + $0xe0] sm:$0xf]  ;;  %v1880_v17 = vld [vmem:[#allocation5 + $0xec] sm:$0xf0] }
  0x11   :  { %257 = vmatpush.bf16.msra.mxu3 %v1673_v8  ;;  %v2201_v18 = vor.u32 %v1878_v13, %v1806_v15  ;;  %v2203_v19 = vor.u32 %v1880_v17, %v1804_v16  ;;  %v1788_v20 = vld [vmem:[#allocation5 + $0xc0] sm:$0xf]  ;;  %v1876_v21 = vld [vmem:[#allocation5 + $0xcc] sm:$0xf0]  ;;  %v1879_v22 = vld [vmem:[#allocation5 + $0xec] sm:$0xf] }
  0x12   :  { %1674 = vmatmul.msk.bf16.vlgmr.msra.gmra.mxu0 %vm150_vm0, %v2188_v9  ;;  %1677 = vmatmul.msk.bf16.vlgmr.msra.gmra.mxu1 %vm150_vm0, %v2193_v10  ;;  %v1814_v23 = vld [vmem:[#allocation5 + $0xf8] sm:$0xf0]  ;;  %v1874_v24 = vld [vmem:[#allocation5 + $0xc4] sm:$0xf]  ;;  %v1790_v25 = vld [vmem:[#allocation5 + $0xd0] sm:$0xf0]  ;;  %v2219_v30 = vor.u32 %v1876_v21, %v1788_v20 }
  0x13   :  { %199 = vmatpush.bf16.msrb.mxu1 %v1665_v14  ;;  %1682 = vmatmul.msk.bf16.vlgmr.msra.gmra.mxu2 %vm150_vm0, %v2188_v9  ;;  %v2211_v26 = vor.u32 %v1879_v22, %v1814_v23  ;;  %v2216_v27 = vor.u32 %v1874_v24, %v1790_v25  ;;  %v1875_v28 = vld [vmem:[#allocation5 + $0xcc] sm:$0xf]  ;;  %v1798_v29 = vld [vmem:[#allocation5 + $0xd8] sm:$0xf0]  ;;  %v1772_v31 = vld [vmem:[#allocation5 + $0xa0] sm:$0xf] }
  0x14   :  { %1686 = vmatmul.msk.bf16.vlgmr.msra.gmra.mxu3 %vm150_vm0, %v2188_v9  ;;  %518 = vmatpush.bf16.msrb.mxu0 %v2203_v19  ;;  %v2222_v32 = vor.u32 %v1875_v28, %v1798_v29  ;;  %v1812_v33 = vld [vmem:[#allocation5 + $0xe8] sm:$0xf]  ;;  %v1881_v34 = vld [vmem:[#allocation5 + $0xf4] sm:$0xf0]  ;;  %v1872_v35 = vld [vmem:[#allocation5 + $0xac] sm:$0xf0] }
  0x15   :  { %557 = vmatpush.bf16.msrb.mxu3 %v2211_v26  ;;  %v2224_v36 = vor.u32 %v1881_v34, %v1812_v33  ;;  %v1870_v37 = vld [vmem:[#allocation5 + $0xa4] sm:$0xf]  ;;  %v1774_v38 = vld [vmem:[#allocation5 + $0xb0] sm:$0xf0]  ;;  %v1796_v40 = vld [vmem:[#allocation5 + $0xc8] sm:$0xf]  ;;  %v2231_v43 = vor.u32 %v1872_v35, %v1772_v31 }
  0x16   :  { %v2228_v39 = vor.u32 %v1870_v37, %v1774_v38  ;;  %v1877_v41 = vld [vmem:[#allocation5 + $0xd4] sm:$0xf0]  ;;  %v1871_v42 = vld [vmem:[#allocation5 + $0xac] sm:$0xf]  ;;  %v1782_v45 = vld [vmem:[#allocation5 + $0xb8] sm:$0xf0] }
  0x17   :  { %531 = vmatpush.bf16.msra.mxu1 %v2201_v18  ;;  %544 = vmatpush.bf16.msrb.mxu2 %v2224_v36  ;;  %v2234_v44 = vor.u32 %v1877_v41, %v1796_v40  ;;  %v1866_v46 = vld [vmem:[#allocation5 + $0x84] sm:$0xf]  ;;  %v1758_v47 = vld [vmem:[#allocation5 + $0x90] sm:$0xf0]  ;;  %v1756_v48 = vld [vmem:[#allocation5 + $0x80] sm:$0xf]  ;;  %v2236_v50 = vor.u32 %v1871_v42, %v1782_v45 }
  0x18   :  { %519 = vmatpush.bf16.msrb.mxu0 %v2219_v30  ;;  %v1868_v49 = vld [vmem:[#allocation5 + $0x8c] sm:$0xf0]  ;;  %v1780_v51 = vld [vmem:[#allocation5 + $0xa8] sm:$0xf]  ;;  %v1873_v52 = vld [vmem:[#allocation5 + $0xb4] sm:$0xf0]  ;;  %v2240_v53 = vor.u32 %v1866_v46, %v1758_v47 }
  0x19   :  { %558 = vmatpush.bf16.msrb.mxu3 %v2222_v32  ;;  %v2242_v54 = vor.u32 %v1873_v52, %v1780_v51  ;;  %v1764_v55 = vld [vmem:[#allocation5 + $0x88] sm:$0xf]  ;;  %v1867_v56 = vld [vmem:[#allocation5 + $0x8c] sm:$0xf]  ;;  %v2245_v57 = vor.u32 %v1868_v49, %v1756_v48  ;;  %v1869_v58 = vld [vmem:[#allocation5 + $0x94] sm:$0xf0] }
  0x1a   :  { %v1766_v59 = vld [vmem:[#allocation5 + $0x98] sm:$0xf0]  ;;  %v2251_v60 = vld [vmem:[%s2779_s0 + $0x8] sm:$0xff]  ;;  %v1740_v61 = vld [vmem:[#allocation5 + $0x60] sm:$0xf]  ;;  %v2257_v0 = vor.u32 %v1869_v58, %v1764_v55  ;;  %s1616_s16 = sshll.u32 %s2120_s15, 4  ;;  %s1617_s16 = int_to_ptr.vmem [resolvable:$true] %s1616_s16 }
  0x1b   :  { %532 = vmatpush.bf16.msra.mxu1 %v2216_v27  ;;  %545 = vmatpush.bf16.msrb.mxu2 %v2234_v44  ;;  %v1864_v62 = vld [vmem:[#allocation5 + $0x6c] sm:$0xf0]  ;;  %v2253_v63 = vor.u32 %v1867_v56, %v1766_v59  ;;  %v1724_v2 = vld [vmem:[#allocation5 + $0x40] sm:$0xf]  ;;  %v1748_v4 = vld [vmem:[#allocation5 + $0x68] sm:$0xf] }
  0x1c   :  { %520 = vmatpush.bf16.msrb.mxu0 %v2231_v43  ;;  %v2260_v1 = vor.u32 %v1864_v62, %v1740_v61  ;;  %v1860_v3 = vld [vmem:[#allocation5 + $0x4c] sm:$0xf0]  ;;  %v1865_v5 = vld [vmem:[#allocation5 + $0x74] sm:$0xf0]  ;;  %v1863_v6 = vld [vmem:[#allocation5 + $0x6c] sm:$0xf] }
  0x1d   :  { %559 = vmatpush.bf16.msrb.mxu3 %v2236_v50  ;;  %v1750_v7 = vld [vmem:[#allocation5 + $0x78] sm:$0xf0]  ;;  %v1708_v8 = vld [vmem:[#allocation5 + $0x20] sm:$0xf]  ;;  %v1862_v11 = vld [vmem:[#allocation5 + $0x64] sm:$0xf]  ;;  %v2272_v13 = vor.u32 %v1865_v5, %v1748_v4  ;;  %v2277_v15 = vor.u32 %v1860_v3, %v1724_v2 }
  0x1e   :  { %v1742_v12 = vld [vmem:[#allocation5 + $0x70] sm:$0xf0]  ;;  %v2274_v14 = vor.u32 %v1863_v6, %v1750_v7  ;;  %v1861_v17 = vld [vmem:[#allocation5 + $0x54] sm:$0xf0]  ;;  %v1859_v20 = vld [vmem:[#allocation5 + $0x4c] sm:$0xf] }
  0x1f   :  { %533 = vmatpush.bf16.msra.mxu1 %v2228_v39  ;;  %546 = vmatpush.bf16.msrb.mxu2 %v2242_v54  ;;  %v2279_v16 = vor.u32 %v1862_v11, %v1742_v12  ;;  %v1734_v21 = vld [vmem:[#allocation5 + $0x58] sm:$0xf0]  ;;  %v1856_v22 = vld [vmem:[#allocation5 + $0x2c] sm:$0xf0]  ;;  %v1858_v24 = vld [vmem:[#allocation5 + $0x44] sm:$0xf] }
  0x20   :  { %521 = vmatpush.bf16.msrb.mxu0 %v2245_v57  ;;  %v2282_v23 = vor.u32 %v1859_v20, %v1734_v21  ;;  %v1726_v25 = vld [vmem:[#allocation5 + $0x50] sm:$0xf0]  ;;  %v1855_v29 = vld [vmem:[#allocation5 + $0x2c] sm:$0xf]  ;;  %v1718_v31 = vld [vmem:[#allocation5 + $0x38] sm:$0xf0]  ;;  %v2291_v34 = vor.u32 %v1856_v22, %v1708_v8 }
  0x21   :  { %560 = vmatpush.bf16.msrb.mxu3 %v2253_v63  ;;  %v2285_v28 = vor.u32 %v1858_v24, %v1726_v25  ;;  %v1716_v35 = vld [vmem:[#allocation5 + $0x28] sm:$0xf]  ;;  %v1857_v37 = vld [vmem:[#allocation5 + $0x34] sm:$0xf0]  ;;  %v1692_v38 = vld [vmem:[#allocation5] sm:$0xf]  ;;  %v2294_v41 = vor.u32 %v1855_v29, %v1718_v31 }
  0x22   :  { %1675 = vmatmul.msk.bf16.gmra.mxu0 %vm150_vm0, %v2251_v60  ;;  %1678 = vmatmul.msk.bf16.vlgmr.msrb.gmra.mxu1 %vm150_vm0, %v2188_v9  ;;  %v1732_v9 = vld [vmem:[#allocation5 + $0x48] sm:$0xf]  ;;  %v1852_v40 = vld [vmem:[#allocation5 + $0xc] sm:$0xf0]  ;;  %v2298_v42 = vor.u32 %v1857_v37, %v1716_v35  ;;  %v1851_v45 = vld [vmem:[#allocation5 + $0xc] sm:$0xf] }
  0x23   :  { %534 = vmatpush.bf16.msra.mxu1 %v2240_v53  ;;  %1683 = vmatmul.msk.bf16.gmra.mxu2 %vm150_vm0, %v2251_v60  ;;  %v2288_v33 = vor.u32 %v1861_v17, %v1732_v9  ;;  %v1702_v46 = vld [vmem:[#allocation5 + $0x18] sm:$0xf0]  ;;  %v2301_v47 = vor.u32 %v1852_v40, %v1692_v38  ;;  %v1700_v48 = vld [vmem:[#allocation5 + $0x8] sm:$0xf]  ;;  %v1853_v49 = vld [vmem:[#allocation5 + $0x14] sm:$0xf0] }
  0x24   :  { %1687 = vmatmul.msk.bf16.gmra.mxu3 %vm150_vm0, %v2251_v60  ;;  %547 = vmatpush.bf16.msrb.mxu2 %v2257_v0  ;;  %v1844_v51 = vld [vmem:[%s2779_s0 + $0x10] sm:$0xff]  ;;  %v2307_v52 = vor.u32 %v1851_v45, %v1702_v46  ;;  %v2310_v55 = vor.u32 %v1853_v49, %v1700_v48  ;;  %v1854_v56 = vld [vmem:[#allocation5 + $0x24] sm:$0xf]  ;;  %v2119_v4 = vmov 0   ;;  %s1618_s18 = sshll.u32 %s2786_s7, 4  ;;  %s1619_s18 = int_to_ptr.hbm [resolvable:$true] %s1618_s18 }
  0x25   :  { %522 = vmatpush.bf16.msrb.mxu0 %v2260_v1  ;;  %561 = vmatpush.bf16.msrb.mxu3 %v2274_v14  ;;  %v1710_v58 = vld [vmem:[#allocation5 + $0x30] sm:$0xf0]  ;;  %v1850_v61 = vld [vmem:[#allocation5 + $0x4] sm:$0xf] }
  0x26   :  { %v2318_v59 = vor.u32 %v1854_v56, %v1710_v58  ;;  %v1694_v62 = vld [vmem:[#allocation5 + $0x10] sm:$0xf0]  ;;  %v311_v3 = vld [vmem:[%s2780_s1] sm:$0xff]  ;;  %1904 = vset.pattern.permute.xlu0 %v2119_v4 }
  0x27   :  { %535 = vmatpush.bf16.msra.mxu1 %v2279_v16  ;;  %v2323_v2 = vor.u32 %v1850_v61, %v1694_v62  ;;  %313 = vperm.xlu0 %1904, %v311_v3  }
  0x28   :  { %548 = vmatpush.bf16.msrb.mxu2 %v2272_v13 }
  0x29   :  { %523 = vmatpush.bf16.msrb.mxu0 %v2277_v15  ;;  %562 = vmatpush.bf16.msrb.mxu3 %v2282_v23 }
  0x2b   :  { %536 = vmatpush.bf16.msra.mxu1 %v2285_v28 }
  0x2c   :  { %549 = vmatpush.bf16.msrb.mxu2 %v2288_v33 }
  0x2d   :  { %524 = vmatpush.bf16.msrb.mxu0 %v2291_v34  ;;  %563 = vmatpush.bf16.msrb.mxu3 %v2294_v41 }
  0x2f   :  { %537 = vmatpush.bf16.msra.mxu1 %v2318_v59 }
  0x30   :  { %550 = vmatpush.bf16.msrb.mxu2 %v2298_v42 }
  0x31   :  { %525 = vmatpush.bf16.msrb.mxu0 %v2301_v47  ;;  %564 = vmatpush.bf16.msrb.mxu3 %v2307_v52 }
  0x32   :  { %1676 = vmatmul.msk.bf16.gmra.mxu0 %vm150_vm0, %v1844_v51  ;;  %1679 = vmatmul.msk.bf16.gmra.mxu1 %vm150_vm0, %v2251_v60  ;;  %v2118_v60 = vmov 0.0|0.0  }
  0x33   :  { %1684 = vmatmul.msk.bf16.gmra.mxu2 %vm150_vm0, %v1844_v51  ;;  %538 = vmatpush.bf16.msra.mxu1 %v2323_v2 }
  0x34   :  { %1688 = vmatmul.msk.bf16.gmra.mxu3 %vm150_vm0, %v1844_v51  ;;  %551 = vmatpush.bf16.msrb.mxu2 %v2310_v55 }
  0x35   :  { %649 = vmatpush.bf16.msra.mxu0 %v2203_v19  ;;  %688 = vmatpush.bf16.msra.mxu3 %v2211_v26 }
  0x37   :  { %662 = vmatpush.bf16.msrb.mxu1 %v2201_v18 }
  0x38   :  { %675 = vmatpush.bf16.msra.mxu2 %v2224_v36 }
  0x39   :  { %650 = vmatpush.bf16.msra.mxu0 %v2219_v30  ;;  %689 = vmatpush.bf16.msra.mxu3 %v2222_v32 }
  0x3b   :  { %663 = vmatpush.bf16.msrb.mxu1 %v2216_v27 }
  0x3c   :  { %676 = vmatpush.bf16.msra.mxu2 %v2234_v44 }
  0x3d   :  { %651 = vmatpush.bf16.msra.mxu0 %v2231_v43  ;;  %690 = vmatpush.bf16.msra.mxu3 %v2236_v50 }
  0x3f   :  { %664 = vmatpush.bf16.msrb.mxu1 %v2228_v39 }
  0x40   :  { %677 = vmatpush.bf16.msra.mxu2 %v2242_v54 }
  0x41   :  { %652 = vmatpush.bf16.msra.mxu0 %v2245_v57  ;;  %691 = vmatpush.bf16.msra.mxu3 %v2253_v63 }
  0x42   :  { %1680 = vmatmul.msk.bf16.gmra.mxu1 %vm150_vm0, %v1844_v51  ;;  %526 = vmatmul.bf16.vlgmr.msrb.gmra.mxu0 %v2118_v60 }
  0x43   :  { %1685 = vmatmul.msk.bf16.gmra.mxu2 %vm150_vm0, %v2193_v10  ;;  %665 = vmatpush.bf16.msrb.mxu1 %v2240_v53 }
  0x44   :  { %1689 = vmatmul.msk.bf16.gmra.mxu3 %vm150_vm0, %v2193_v10  ;;  %678 = vmatpush.bf16.msra.mxu2 %v2257_v0 }
  0x45   :  { %653 = vmatpush.bf16.msra.mxu0 %v2260_v1  ;;  %692 = vmatpush.bf16.msra.mxu3 %v2274_v14 }
  0x47   :  { %666 = vmatpush.bf16.msrb.mxu1 %v2279_v16 }
  0x48   :  { %679 = vmatpush.bf16.msra.mxu2 %v2272_v13 }
  0x49   :  { %654 = vmatpush.bf16.msra.mxu0 %v2277_v15  ;;  %693 = vmatpush.bf16.msra.mxu3 %v2282_v23 }
  0x4b   :  { %667 = vmatpush.bf16.msrb.mxu1 %v2285_v28 }
  0x4c   :  { %680 = vmatpush.bf16.msra.mxu2 %v2288_v33 }
  0x4d   :  { %655 = vmatpush.bf16.msra.mxu0 %v2291_v34  ;;  %694 = vmatpush.bf16.msra.mxu3 %v2294_v41 }
  0x4f   :  { %668 = vmatpush.bf16.msrb.mxu1 %v2318_v59 }
  0x50   :  { %681 = vmatpush.bf16.msra.mxu2 %v2298_v42 }
  0x51   :  { %656 = vmatpush.bf16.msra.mxu0 %v2301_v47  ;;  %695 = vmatpush.bf16.msra.mxu3 %v2307_v52 }
  0x52   :  { %1681 = vmatmul.msk.bf16.gmra.mxu1 %vm150_vm0, %v2193_v10  ;;  %v100_v10 = vld [vmem:[%s2783_s4] sm:$0xf] }
  0x53   :  { %552 = vmatmul.bf16.vlgmr.msrb.gmra.mxu2 %v2118_v60  ;;  %669 = vmatpush.bf16.msrb.mxu1 %v2323_v2  ;;  %v2403_v5 = vperm.slane %v100_v10, 0  ;;  %v2417_v21 = vperm.slane %v100_v10, 2  ;;  %v2419_v22 = vperm.slane %v100_v10, 3  ;;  %v2432_v45 = vperm.slane %v100_v10, 1 }
  0x54   :  { %565 = vmatmul.bf16.vlgmr.msrb.gmra.mxu3 %v2118_v60  ;;  %682 = vmatpush.bf16.msra.mxu2 %v2310_v55 }
  0x55   :  { %781 = vmatpush.bf16.msrb.mxu0 %v2203_v19  ;;  %820 = vmatpush.bf16.msrb.mxu3 %v2211_v26  ;;  %2788 = vst [vmem:[#allocation14_spill] sm:$0xff] %v2403_v5 }
  0x58   :  { %807 = vmatpush.bf16.msrb.mxu2 %v2224_v36 }
  0x59   :  { %782 = vmatpush.bf16.msrb.mxu0 %v2219_v30  ;;  %821 = vmatpush.bf16.msrb.mxu3 %v2222_v32 }
  0x5c   :  { %808 = vmatpush.bf16.msrb.mxu2 %v2234_v44 }
  0x5d   :  { %783 = vmatpush.bf16.msrb.mxu0 %v2231_v43  ;;  %822 = vmatpush.bf16.msrb.mxu3 %v2236_v50 }
  0x60   :  { %809 = vmatpush.bf16.msrb.mxu2 %v2242_v54 }
  0x61   :  { %784 = vmatpush.bf16.msrb.mxu0 %v2245_v57  ;;  %823 = vmatpush.bf16.msrb.mxu3 %v2253_v63 }
  0x62   :  { %539 = vmatmul.bf16.vlgmr.msra.gmra.mxu1 %v2118_v60 }
  0x63   :  { %794 = vmatpush.bf16.msra.mxu1 %v2201_v18 }
  0x64   :  { %810 = vmatpush.bf16.msrb.mxu2 %v2257_v0 }
  0x65   :  { %785 = vmatpush.bf16.msrb.mxu0 %v2260_v1  ;;  %824 = vmatpush.bf16.msrb.mxu3 %v2274_v14 }
  0x67   :  { %795 = vmatpush.bf16.msra.mxu1 %v2216_v27 }
  0x68   :  { %811 = vmatpush.bf16.msrb.mxu2 %v2272_v13 }
  0x69   :  { %786 = vmatpush.bf16.msrb.mxu0 %v2277_v15  ;;  %825 = vmatpush.bf16.msrb.mxu3 %v2282_v23 }
  0x6b   :  { %796 = vmatpush.bf16.msra.mxu1 %v2228_v39 }
  0x6c   :  { %812 = vmatpush.bf16.msrb.mxu2 %v2288_v33 }
  0x6d   :  { %787 = vmatpush.bf16.msrb.mxu0 %v2291_v34  ;;  %826 = vmatpush.bf16.msrb.mxu3 %v2294_v41 }
  0x6f   :  { %797 = vmatpush.bf16.msra.mxu1 %v2240_v53 }
  0x70   :  { %813 = vmatpush.bf16.msrb.mxu2 %v2298_v42 }
  0x71   :  { %788 = vmatpush.bf16.msrb.mxu0 %v2301_v47  ;;  %827 = vmatpush.bf16.msrb.mxu3 %v2307_v52 }
  0x73   :  { %798 = vmatpush.bf16.msra.mxu1 %v2279_v16 }
  0x74   :  { %814 = vmatpush.bf16.msrb.mxu2 %v2310_v55 }
  0x77   :  { %799 = vmatpush.bf16.msra.mxu1 %v2285_v28 }
  0x7b   :  { %800 = vmatpush.bf16.msra.mxu1 %v2318_v59 }
  0x7f   :  { %801 = vmatpush.bf16.msra.mxu1 %v2323_v2 }
  0x8f   :  { %v172_v6 = vpop.f32.mrf.mxu0  ;;  %v187_v7 = vpop.f32.mrf.mxu1 }
  0x90   :  { %v2406_v8 = vadd.f32 %v187_v7, %v2403_v5 }
  0x92   :  { %2789 = vst [vmem:[#allocation15_spill] sm:$0xff] %v2406_v8 }
  0x96   :  { %v2408_v11 = vpop.f32.mrf.mxu2 }
  0x97   :  { %v2410_v12 = vpop.f32.mrf.mxu3  ;;  %v174_v9 = vpop.f32.mrf.mxu0 }
  0x98   :  { %v2413_v17 = vadd.f32 %v174_v9, %v2403_v5  ;;  %v2415_v20 = vpop.f32.mrf.mxu1 }
  0x99   :  { %2790 = vst [vmem:[#allocation16_spill] sm:$0xff] %v2415_v20 }
  0x9e   :  { %v232_v24 = vpop.f32.mrf.mxu2 }
  0x9f   :  { %v2422_v25 = vadd.f32 %v232_v24, %v2417_v21  ;;  %v261_v29 = vpop.f32.mrf.mxu3  ;;  %v177_v31 = vpop.f32.mrf.mxu0 }
  0xa0   :  { %v2425_v35 = vadd.f32 %v261_v29, %v2419_v22  ;;  %v2428_v37 = vadd.f32 %v177_v31, %v2403_v5  ;;  %v2430_v38 = vpop.f32.mrf.mxu1 }
  0xa6   :  { %v235_v40 = vpop.f32.mrf.mxu2 }
  0xa7   :  { %v2435_v46 = vadd.f32 %v235_v40, %v2417_v21  ;;  %v264_v48 = vpop.f32.mrf.mxu3  ;;  %v179_v49 = vpop.f32.mrf.mxu0 }
  0xa8   :  { %v2438_v51 = vadd.f32 %v264_v48, %v2419_v22  ;;  %v2441_v56 = vadd.f32 %v179_v49, %v2403_v5  ;;  %v203_v58 = vpop.f32.mrf.mxu1 }
  0xa9   :  { %v2444_v61 = vadd.f32 %v203_v58, %v2432_v45 }
  0xaa   :  { %2791 = vst [vmem:[#allocation17_spill] sm:$0xff] %v2441_v56 }
  0xae   :  { %v237_v62 = vpop.f32.mrf.mxu2 }
  0xaf   :  { %v2447_v60 = vadd.f32 %v237_v62, %v2417_v21  ;;  %v266_v3 = vpop.f32.mrf.mxu3  ;;  %v182_v4 = vpop.f32.mrf.mxu0 }
  0xb0   :  { %v2450_v10 = vadd.f32 %v266_v3, %v2419_v22  ;;  %v2453_v7 = vadd.f32 %v182_v4, %v2403_v5  ;;  %v206_v9 = vpop.f32.mrf.mxu1  ;;  %v173_v4 = vadd.f32 %v172_v6, %v2403_v5 }
  0xb1   :  { %2792 = vst [vmem:[#allocation18_spill] sm:$0xff] %v2447_v60  ;;  %v2456_v24 = vadd.f32 %v206_v9, %v2432_v45 }
  0xb2   :  { %2793 = vst [vmem:[#allocation19_spill] sm:$0xff] %v2450_v10 }
  0xb3   :  { %2794 = vst [vmem:[#allocation20_spill] sm:$0xff] %v2453_v7 }
  0xb6   :  { %v240_v29 = vpop.f32.mrf.mxu2 }
  0xb7   :  { %v2459_v31 = vadd.f32 %v240_v29, %v2417_v21  ;;  %v269_v40 = vpop.f32.mrf.mxu3  ;;  %v184_v48 = vpop.f32.mrf.mxu0 }
  0xb8   :  { %v2462_v49 = vadd.f32 %v269_v40, %v2419_v22  ;;  %v2465_v58 = vadd.f32 %v184_v48, %v2403_v5  ;;  %v208_v62 = vpop.f32.mrf.mxu1 }
  0xb9   :  { %2795 = vst [vmem:[#allocation21_spill] sm:$0xff] %v2459_v31  ;;  %v2468_v3 = vadd.f32 %v208_v62, %v2432_v45 }
  0xba   :  { %2796 = vst [vmem:[#allocation22_spill] sm:$0xff] %v2462_v49 }
  0xbb   :  { %2797 = vst [vmem:[#allocation23_spill] sm:$0xff] %v2465_v58 }
  0xbc   :  { %2798 = vst [vmem:[#allocation24_spill] sm:$0xff] %v2468_v3 }
  0xbe   :  { %v242_v9 = vpop.f32.mrf.mxu2 }
  0xbf   :  { %v2472_v20 = vadd.f32 %v242_v9, %v2417_v21  ;;  %v271_v29 = vpop.f32.mrf.mxu3  ;;  %v527_v8 = vpop.f32.mrf.mxu0 }
  0xc0   :  { %v2475_v31 = vadd.f32 %v271_v29, %v2419_v22  ;;  %v211_v40 = vpop.f32.mrf.mxu1  ;;  %v570_v49 = vadd.f32 %v527_v8, %v173_v4 }
  0xc1   :  { %2799 = vst [vmem:[#allocation25_spill] sm:$0xff] %v2472_v20  ;;  %v2478_v48 = vadd.f32 %v211_v40, %v2432_v45 }
  0xc2   :  { %2800 = vst [vmem:[#allocation26_spill] sm:$0xff] %v2475_v31  ;;  %v1818_v58 = vmul.f32 -1.442695, %v570_v49 }
  0xc3   :  { %2801 = vst [vmem:[#allocation27_spill] sm:$0xff] %v2478_v48 }
  0xc4   :  { %1906 = vpow2.f32 %v1818_v58 }
  0xc6   :  { %v245_v62 = vpop.f32.mrf.mxu2 }
  0xc7   :  { %v2481_v7 = vadd.f32 %v245_v62, %v2417_v21  ;;  %v274_v6 = vpop.f32.mrf.mxu3  ;;  %v529_v5 = vpop.f32.mrf.mxu0 }
  0xc8   :  { %v2484_v9 = vadd.f32 %v274_v6, %v2419_v22  ;;  %v213_v20 = vpop.f32.mrf.mxu1 }
  0xc9   :  { %2802 = vst [vmem:[#allocation28_spill] sm:$0xff] %v2481_v7  ;;  %v2487_v29 = vadd.f32 %v213_v20, %v2432_v45  ;;  %v231_v20 = vadd.f32 %v2408_v11, %v2417_v21 }
  0xca   :  { %2803 = vst [vmem:[#allocation29_spill] sm:$0xff] %v2484_v9  ;;  %v1907_v31 = vpop.eup %1906 }
  0xcb   :  { %2804 = vst [vmem:[#allocation30_spill] sm:$0xff] %v2487_v29  ;;  %v577_v8 = vadd.f32 1.0, %v1907_v31  ;;  %v260_v29 = vadd.f32 %v2410_v12, %v2419_v22 }
  0xcd   :  { %1908 = vrcp.f32 %v577_v8  ;;  %vm583_vm2 = vweird.f32 %v577_v8 }
  0xce   :  { %v247_v4 = vpop.f32.mrf.mxu2 }
  0xcf   :  { %v2490_v49 = vadd.f32 %v247_v4, %v2417_v21  ;;  %v276_v58 = vpop.f32.mrf.mxu3 }
  0xd0   :  { %v2493_v40 = vadd.f32 %v276_v58, %v2419_v22  ;;  %v216_v62 = vpop.f32.mrf.mxu1  ;;  %v587_v58 = vand.u32 2147483647, %v577_v8 }
  0xd1   :  { %2805 = vst [vmem:[#allocation31_spill] sm:$0xff] %v2490_v49  ;;  %v2496_v5 = vadd.f32 %v216_v62, %v2432_v45  ;;  %v589_v49 = vand.u32 2147483648, %v577_v8 }
  0xd2   :  { %2806 = vst [vmem:[#allocation32_spill] sm:$0xff] %v2493_v40  ;;  %vm588_vm4 = vcmp.eq.f32.partialorder %v587_v58, 8.507059e+37 }
  0xd3   :  { %2807 = vst [vmem:[#allocation33_spill] sm:$0xff] %v2496_v5  ;;  %v1909_v6 = vpop.eup %1908  ;;  %v590_v11 = vor.u32 1.1754944e-38, %v589_v49 }
  0xd4   :  { %v579_v7 = vmul.f32 %v1909_v6, %v577_v8  ;;  %vm584_vm1 = vweird.f32 %v1909_v6 }
  0xd5   :  { %vm585_vm3 = vmor %vm583_vm2, %vm584_vm1 }
  0xd6   :  { %v580_v9 = vsub.f32 1.0, %v579_v7  ;;  %v553_v31 = vpop.f32.mrf.mxu2 }
  0xd7   :  { %v572_v4 = vadd.f32 %v553_v31, %v231_v20  ;;  %v566_v48 = vpop.f32.mrf.mxu3 }
  0xd8   :  { %v581_v60 = vmul.f32 %v1909_v6, %v580_v9  ;;  %v218_v40 = vpop.f32.mrf.mxu1  ;;  %v573_v62 = vadd.f32 %v566_v48, %v260_v29  ;;  %v202_v9 = vadd.f32 %v2430_v38, %v2432_v45 }
  0xd9   :  { %1910 = vtanh.f32 %v572_v4  ;;  %v2503_v5 = vadd.f32 %v218_v40, %v2432_v45 }
  0xda   :  { %v582_v10 = vadd.f32 %v1909_v6, %v581_v60  ;;  %v1820_v12 = vmul.f32 -1.442695, %v573_v62 }
  0xdb   :  { %2808 = vst [vmem:[#allocation34_spill] sm:$0xff] %v2503_v5 }
  0xdc   :  { %v586_v21 = vsel %vm585_vm3, %v1909_v6, %v582_v10  ;;  %1912 = vpow2.f32 %v1820_v12 }
  0xdd   :  { %v591_v7 = vsel %vm588_vm4, %v590_v11, %v586_v21 }
  0xde   :  { %v555_v22 = vpop.f32.mrf.mxu2 }
  0xdf   :  { %v1911_v20 = vpop.eup %1910  ;;  %v568_v31 = vpop.f32.mrf.mxu3 }
  0xe0   :  { %v633_v3 = vmul.f32 %v1911_v20, %v591_v7  ;;  %v540_v4 = vpop.f32.mrf.mxu1 }
  0xe1   :  { %v571_v48 = vadd.f32 %v540_v4, %v202_v9  ;;  %v2507_v9 = vpop.permute.xlu0 %313 }
  0xe2   :  { %v1913_v60 = vpop.eup %1912  ;;  %vm638_vm9 = vcmp.gt.s32.totalorder %v2507_v9, 0 }
  0xe3   :  { %v1819_v29 = vmul.f32 -1.442695, %v571_v48  ;;  %v616_v40 = vadd.f32 1.0, %v1913_v60  ;;  %vm1882_vm14 = vmpackc.low %vm638_vm9, %vm638_vm9 }
  0xe5   :  { %1914 = vpow2.f32 %v1819_v29  ;;  %vm622_vm11 = vweird.f32 %v616_v40 }
  0xe6   :  { %1916 = vrcp.f32 %v616_v40 }
  0xe8   :  { %v542_v8 = vpop.f32.mrf.mxu1 }
  0xeb   :  { %v1915_v49 = vpop.eup %1914 }
  0xec   :  { %v596_v10 = vadd.f32 1.0, %v1915_v49  ;;  %v1917_v6 = vpop.eup %1916  ;;  %v628_v49 = vand.u32 2147483648, %v616_v40 }
  0xed   :  { %v618_v11 = vmul.f32 %v1917_v6, %v616_v40  ;;  %vm623_vm10 = vweird.f32 %v1917_v6 }
  0xee   :  { %1918 = vrcp.f32 %v596_v10  ;;  %v608_v38 = vand.u32 2147483648, %v596_v10  ;;  %v606_v7 = vand.u32 2147483647, %v596_v10  ;;  %vm602_vm6 = vweird.f32 %v596_v10  ;;  %vm624_vm12 = vmor %vm622_vm11, %vm623_vm10 }
  0xef   :  { %v619_v12 = vsub.f32 1.0, %v618_v11 }
  0xf0   :  { %v609_v20 = vor.u32 1.1754944e-38, %v608_v38  ;;  %vm607_vm8 = vcmp.eq.f32.partialorder %v606_v7, 8.507059e+37 }
  0xf1   :  { %v620_v4 = vmul.f32 %v1917_v6, %v619_v12 }
  0xf3   :  { %v621_v8 = vadd.f32 %v1917_v6, %v620_v4 }
  0xf4   :  { %v1919_v58 = vpop.eup %1918 }
  0xf5   :  { %v598_v62 = vmul.f32 %v1919_v58, %v596_v10  ;;  %vm603_vm5 = vweird.f32 %v1919_v58  ;;  %v626_v10 = vand.u32 2147483647, %v616_v40  ;;  %v625_v11 = vsel %vm624_vm12, %v1917_v6, %v621_v8 }
  0xf6   :  { %vm604_vm7 = vmor %vm602_vm6, %vm603_vm5 }
  0xf7   :  { %v599_v21 = vsub.f32 1.0, %v598_v62  ;;  %vm627_vm13 = vcmp.eq.f32.partialorder %v626_v10, 8.507059e+37 }
  0xf9   :  { %v600_v45 = vmul.f32 %v1919_v58, %v599_v21  ;;  %v629_v21 = vor.u32 1.1754944e-38, %v628_v49 }
  0xfb   :  { %v601_v22 = vadd.f32 %v1919_v58, %v600_v45  ;;  %v630_v38 = vsel %vm627_vm13, %v629_v21, %v625_v11 }
  0xfd   :  { %v605_v31 = vsel %vm604_vm7, %v1919_v58, %v601_v22 }
  0xfe   :  { %v610_v48 = vsel %vm607_vm8, %v609_v20, %v605_v31  ;;  %vm770_vm8 = vcmp.gt.s32.totalorder %v2507_v9, 1 }
  0xff   :  { %v632_v29 = vmul.f32 0.0, %v610_v48 }
 0x101   :  { %v634_v60 = vadd.f32 %v633_v3, %v632_v29 }
 0x103   :  { %1920 = vtanh.f32 %v634_v60  ;;  %v2512_v62 = vsel %vm638_vm9, %v634_v60, 0.0 }
 0x109   :  { %v1921_v58 = vpop.eup %1920 }
 0x10a   :  { %v636_v45 = vmul.f32 %v1921_v58, %v630_v38 }
 0x10c   :  { %v2519_v3 = vsel %vm638_vm9, %v636_v45, 0.0  ;;  %v1883_v7 = vpack.c.bf16 %v636_v45, %v636_v45 }
 0x10e   :  { %1884 = vmatmul.msk.bf16.vlgmr.msra.gmra.mxu0 %vm1882_vm14, %v1883_v7  ;;  %1887 = vmatmul.msk.bf16.vlgmr.msrb.gmra.mxu1 %vm1882_vm14, %v1883_v7 }
 0x10f   :  { %1890 = vmatmul.msk.bf16.vlgmr.msra.gmra.mxu2 %vm1882_vm14, %v1883_v7  ;;  %1893 = vmatmul.msk.bf16.vlgmr.msra.gmra.mxu3 %vm1882_vm14, %v1883_v7 }
 0x110   :  { %913 = vmatpush.bf16.msra.mxu0 %v2203_v19  ;;  %926 = vmatpush.bf16.msrb.mxu1 %v2201_v18 }
 0x111   :  { %939 = vmatpush.bf16.msra.mxu2 %v2224_v36  ;;  %952 = vmatpush.bf16.msra.mxu3 %v2211_v26 }
 0x114   :  { %914 = vmatpush.bf16.msra.mxu0 %v2219_v30  ;;  %927 = vmatpush.bf16.msrb.mxu1 %v2216_v27 }
 0x115   :  { %940 = vmatpush.bf16.msra.mxu2 %v2234_v44  ;;  %953 = vmatpush.bf16.msra.mxu3 %v2222_v32 }
 0x118   :  { %915 = vmatpush.bf16.msra.mxu0 %v2231_v43  ;;  %928 = vmatpush.bf16.msrb.mxu1 %v2228_v39 }
 0x119   :  { %941 = vmatpush.bf16.msra.mxu2 %v2242_v54  ;;  %954 = vmatpush.bf16.msra.mxu3 %v2236_v50 }
 0x11c   :  { %916 = vmatpush.bf16.msra.mxu0 %v2245_v57  ;;  %929 = vmatpush.bf16.msrb.mxu1 %v2240_v53 }
 0x11d   :  { %942 = vmatpush.bf16.msra.mxu2 %v2257_v0  ;;  %955 = vmatpush.bf16.msra.mxu3 %v2253_v63 }
 0x120   :  { %917 = vmatpush.bf16.msra.mxu0 %v2260_v1  ;;  %930 = vmatpush.bf16.msrb.mxu1 %v2279_v16 }
 0x121   :  { %943 = vmatpush.bf16.msra.mxu2 %v2272_v13  ;;  %956 = vmatpush.bf16.msra.mxu3 %v2274_v14 }
 0x124   :  { %918 = vmatpush.bf16.msra.mxu0 %v2277_v15  ;;  %931 = vmatpush.bf16.msrb.mxu1 %v2285_v28 }
 0x125   :  { %944 = vmatpush.bf16.msra.mxu2 %v2288_v33  ;;  %957 = vmatpush.bf16.msra.mxu3 %v2282_v23 }
 0x128   :  { %919 = vmatpush.bf16.msra.mxu0 %v2291_v34  ;;  %932 = vmatpush.bf16.msrb.mxu1 %v2318_v59 }
 0x129   :  { %945 = vmatpush.bf16.msra.mxu2 %v2298_v42  ;;  %958 = vmatpush.bf16.msra.mxu3 %v2294_v41 }
 0x12c   :  { %920 = vmatpush.bf16.msra.mxu0 %v2301_v47  ;;  %933 = vmatpush.bf16.msrb.mxu1 %v2323_v2 }
 0x12d   :  { %946 = vmatpush.bf16.msra.mxu2 %v2310_v55  ;;  %959 = vmatpush.bf16.msra.mxu3 %v2307_v52 }
 0x18b   :  { %v658_v40 = vpop.f32.mrf.mxu0  ;;  %v671_v6 = vpop.f32.mrf.mxu1 }
 0x18c   :  { %v701_v12 = vadd.f32 %v658_v40, %v2413_v17  ;;  %v702_v22 = vadd.f32 %v671_v6, %v2444_v61 }
 0x18e   :  { %v1821_v20 = vmul.f32 -1.442695, %v701_v12  ;;  %v1822_v31 = vmul.f32 -1.442695, %v702_v22 }
 0x190   :  { %1922 = vpow2.f32 %v1821_v20 }
 0x191   :  { %1924 = vpow2.f32 %v1822_v31 }
 0x192   :  { %v684_v4 = vpop.f32.mrf.mxu2  ;;  %v697_v48 = vpop.f32.mrf.mxu3 }
 0x193   :  { %v704_v29 = vadd.f32 %v697_v48, %v2425_v35  ;;  %v660_v60 = vpop.f32.mrf.mxu0  ;;  %v673_v8 = vpop.f32.mrf.mxu1  ;;  %v703_v40 = vadd.f32 %v684_v4, %v2422_v25 }
 0x195   :  { %v1823_v49 = vmul.f32 -1.442695, %v704_v29 }
 0x196   :  { %v1923_v10 = vpop.eup %1922 }
 0x197   :  { %v1925_v11 = vpop.eup %1924  ;;  %v708_v21 = vadd.f32 1.0, %v1923_v10  ;;  %1926 = vpow2.f32 %v1823_v49 }
 0x198   :  { %v727_v58 = vadd.f32 1.0, %v1925_v11 }
 0x199   :  { %1928 = vrcp.f32 %v708_v21  ;;  %v720_v31 = vand.u32 2147483648, %v708_v21  ;;  %v718_v60 = vand.u32 2147483647, %v708_v21  ;;  %vm714_vm1 = vweird.f32 %v708_v21 }
 0x19a   :  { %1930 = vrcp.f32 %v727_v58  ;;  %v686_v17 = vpop.f32.mrf.mxu2  ;;  %v699_v61 = vpop.f32.mrf.mxu3  ;;  %v739_v48 = vand.u32 2147483648, %v727_v58  ;;  %v737_v49 = vand.u32 2147483647, %v727_v58  ;;  %vm733_vm2 = vweird.f32 %v727_v58 }
 0x19b   :  { %v721_v25 = vor.u32 1.1754944e-38, %v720_v31  ;;  %vm719_vm5 = vcmp.eq.f32.partialorder %v718_v60, 8.507059e+37 }
 0x19c   :  { %v740_v61 = vor.u32 1.1754944e-38, %v739_v48  ;;  %vm738_vm6 = vcmp.eq.f32.partialorder %v737_v49, 8.507059e+37 }
 0x19d   :  { %v1927_v38 = vpop.eup %1926 }
 0x19e   :  { %v747_v45 = vadd.f32 1.0, %v1927_v38 }
 0x19f   :  { %v1929_v7 = vpop.eup %1928 }
 0x1a0   :  { %v1931_v6 = vpop.eup %1930  ;;  %v710_v12 = vmul.f32 %v1929_v7, %v708_v21  ;;  %1932 = vrcp.f32 %v747_v45  ;;  %vm715_vm15 = vweird.f32 %v1929_v7  ;;  %v759_v31 = vand.u32 2147483648, %v747_v45 }
 0x1a1   :  { %v729_v35 = vmul.f32 %v1931_v6, %v727_v58  ;;  %1934 = vtanh.f32 %v703_v40  ;;  %vm734_vm0 = vweird.f32 %v1931_v6  ;;  %vm716_vm3 = vmor %vm714_vm1, %vm715_vm15  ;;  %vm753_vm9 = vweird.f32 %v747_v45 }
 0x1a2   :  { %v711_v22 = vsub.f32 1.0, %v710_v12  ;;  %vm735_vm4 = vmor %vm733_vm2, %vm734_vm0  ;;  %v757_v48 = vand.u32 2147483647, %v747_v45  ;;  %v760_v60 = vor.u32 1.1754944e-38, %v759_v31 }
 0x1a3   :  { %v730_v20 = vsub.f32 1.0, %v729_v35 }
 0x1a4   :  { %v712_v29 = vmul.f32 %v1929_v7, %v711_v22  ;;  %vm758_vm11 = vcmp.eq.f32.partialorder %v757_v48, 8.507059e+37 }
 0x1a5   :  { %v731_v8 = vmul.f32 %v1931_v6, %v730_v20 }
 0x1a6   :  { %v1933_v10 = vpop.eup %1932  ;;  %v713_v11 = vadd.f32 %v1929_v7, %v712_v29 }
 0x1a7   :  { %v732_v4 = vadd.f32 %v1931_v6, %v731_v8  ;;  %v749_v17 = vmul.f32 %v1933_v10, %v747_v45  ;;  %v1935_v40 = vpop.eup %1934  ;;  %vm754_vm7 = vweird.f32 %v1933_v10 }
 0x1a8   :  { %v717_v38 = vsel %vm716_vm3, %v1929_v7, %v713_v11  ;;  %vm755_vm10 = vmor %vm753_vm9, %vm754_vm7 }
 0x1a9   :  { %v722_v12 = vsel %vm719_vm5, %v721_v25, %v717_v38  ;;  %v736_v35 = vsel %vm735_vm4, %v1931_v6, %v732_v4  ;;  %v750_v22 = vsub.f32 1.0, %v749_v17  ;;  %vm902_vm5 = vcmp.gt.s32.totalorder %v2507_v9, 2 }
 0x1aa   :  { %v741_v20 = vsel %vm738_vm6, %v740_v61, %v736_v35  ;;  %v764_v5 = vmul.f32 %v1935_v40, %v722_v12 }
 0x1ab   :  { %v763_v56 = vmul.f32 %v741_v20, %v2512_v62  ;;  %v751_v29 = vmul.f32 %v1933_v10, %v750_v22 }
 0x1ad   :  { %v765_v21 = vadd.f32 %v764_v5, %v763_v56  ;;  %v752_v58 = vadd.f32 %v1933_v10, %v751_v29 }
 0x1af   :  { %1936 = vtanh.f32 %v765_v21  ;;  %v2560_v7 = vsel %vm770_vm8, %v765_v21, %v2512_v62  ;;  %v756_v6 = vsel %vm755_vm10, %v1933_v10, %v752_v58 }
 0x1b0   :  { %v761_v49 = vsel %vm758_vm11, %v760_v60, %v756_v6 }
 0x1b5   :  { %v1937_v8 = vpop.eup %1936 }
 0x1b6   :  { %v767_v11 = vmul.f32 %v1937_v8, %v761_v49 }
 0x1b8   :  { %v2563_v56 = vsel %vm770_vm8, %v767_v11, %v2519_v3 }
 0x1b9   :  { %v780_v5 = vpack.c.bf16 %v2563_v56, %v2563_v56 }
 0x1bb   :  { %789 = vmatmul.bf16.vlgmr.msrb.gmra.mxu0 %v780_v5  ;;  %802 = vmatmul.bf16.vlgmr.msra.gmra.mxu1 %v780_v5 }
 0x1bc   :  { %815 = vmatmul.bf16.vlgmr.msrb.gmra.mxu2 %v780_v5  ;;  %828 = vmatmul.bf16.vlgmr.msrb.gmra.mxu3 %v780_v5 }
 0x1bd   :  { %1045 = vmatpush.bf16.msrb.mxu0 %v2203_v19  ;;  %1058 = vmatpush.bf16.msra.mxu1 %v2201_v18 }
 0x1be   :  { %1071 = vmatpush.bf16.msrb.mxu2 %v2224_v36  ;;  %1084 = vmatpush.bf16.msrb.mxu3 %v2211_v26 }
 0x1c1   :  { %1046 = vmatpush.bf16.msrb.mxu0 %v2219_v30  ;;  %1059 = vmatpush.bf16.msra.mxu1 %v2216_v27 }
 0x1c2   :  { %1072 = vmatpush.bf16.msrb.mxu2 %v2234_v44  ;;  %1085 = vmatpush.bf16.msrb.mxu3 %v2222_v32 }
 0x1c5   :  { %1047 = vmatpush.bf16.msrb.mxu0 %v2231_v43  ;;  %1060 = vmatpush.bf16.msra.mxu1 %v2228_v39 }
 0x1c6   :  { %1073 = vmatpush.bf16.msrb.mxu2 %v2242_v54  ;;  %1086 = vmatpush.bf16.msrb.mxu3 %v2236_v50 }
 0x1c9   :  { %1048 = vmatpush.bf16.msrb.mxu0 %v2245_v57  ;;  %1061 = vmatpush.bf16.msra.mxu1 %v2240_v53 }
 0x1ca   :  { %1074 = vmatpush.bf16.msrb.mxu2 %v2257_v0  ;;  %1087 = vmatpush.bf16.msrb.mxu3 %v2253_v63 }
 0x1cd   :  { %1049 = vmatpush.bf16.msrb.mxu0 %v2260_v1  ;;  %1062 = vmatpush.bf16.msra.mxu1 %v2279_v16 }
 0x1ce   :  { %1075 = vmatpush.bf16.msrb.mxu2 %v2272_v13  ;;  %1088 = vmatpush.bf16.msrb.mxu3 %v2274_v14 }
 0x1d1   :  { %1050 = vmatpush.bf16.msrb.mxu0 %v2277_v15  ;;  %1063 = vmatpush.bf16.msra.mxu1 %v2285_v28 }
 0x1d2   :  { %1076 = vmatpush.bf16.msrb.mxu2 %v2288_v33  ;;  %1089 = vmatpush.bf16.msrb.mxu3 %v2282_v23 }
 0x1d5   :  { %1051 = vmatpush.bf16.msrb.mxu0 %v2291_v34  ;;  %1064 = vmatpush.bf16.msra.mxu1 %v2318_v59 }
 0x1d6   :  { %1077 = vmatpush.bf16.msrb.mxu2 %v2298_v42  ;;  %1090 = vmatpush.bf16.msrb.mxu3 %v2294_v41 }
 0x1d9   :  { %1052 = vmatpush.bf16.msrb.mxu0 %v2301_v47  ;;  %1065 = vmatpush.bf16.msra.mxu1 %v2323_v2 }
 0x1da   :  { %1078 = vmatpush.bf16.msrb.mxu2 %v2310_v55  ;;  %1091 = vmatpush.bf16.msrb.mxu3 %v2307_v52 }
 0x238   :  { %v790_v62 = vpop.f32.mrf.mxu0  ;;  %v803_v3 = vpop.f32.mrf.mxu1 }
 0x239   :  { %v833_v45 = vadd.f32 %v790_v62, %v2428_v37  ;;  %v834_v10 = vadd.f32 %v803_v3, %v2456_v24 }
 0x23b   :  { %v1824_v25 = vmul.f32 -1.442695, %v833_v45  ;;  %v1825_v4 = vmul.f32 -1.442695, %v834_v10 }
 0x23d   :  { %1938 = vpow2.f32 %v1824_v25 }
 0x23e   :  { %1940 = vpow2.f32 %v1825_v4 }
 0x23f   :  { %v816_v17 = vpop.f32.mrf.mxu2  ;;  %v829_v61 = vpop.f32.mrf.mxu3 }
 0x240   :  { %v836_v38 = vadd.f32 %v829_v61, %v2438_v51  ;;  %v792_v40 = vpop.f32.mrf.mxu0  ;;  %v805_v12 = vpop.f32.mrf.mxu1  ;;  %v835_v6 = vadd.f32 %v816_v17, %v2435_v46 }
 0x242   :  { %v1826_v35 = vmul.f32 -1.442695, %v836_v38 }
 0x243   :  { %v1939_v22 = vpop.eup %1938 }
 0x244   :  { %v1941_v20 = vpop.eup %1940  ;;  %v840_v29 = vadd.f32 1.0, %v1939_v22  ;;  %1942 = vpow2.f32 %v1826_v35 }
 0x245   :  { %v859_v21 = vadd.f32 1.0, %v1941_v20 }
 0x246   :  { %1944 = vrcp.f32 %v840_v29  ;;  %v852_v5 = vand.u32 2147483648, %v840_v29  ;;  %v850_v45 = vand.u32 2147483647, %v840_v29  ;;  %vm846_vm14 = vweird.f32 %v840_v29 }
 0x247   :  { %1946 = vrcp.f32 %v859_v21  ;;  %v818_v37 = vpop.f32.mrf.mxu2  ;;  %v831_v24 = vpop.f32.mrf.mxu3  ;;  %v871_v62 = vand.u32 2147483648, %v859_v21  ;;  %v869_v25 = vand.u32 2147483647, %v859_v21  ;;  %vm865_vm15 = vweird.f32 %v859_v21 }
 0x248   :  { %v853_v46 = vor.u32 1.1754944e-38, %v852_v5  ;;  %vm851_vm2 = vcmp.eq.f32.partialorder %v850_v45, 8.507059e+37 }
 0x249   :  { %v872_v40 = vor.u32 1.1754944e-38, %v871_v62  ;;  %vm870_vm3 = vcmp.eq.f32.partialorder %v869_v25, 8.507059e+37 }
 0x24a   :  { %v1943_v58 = vpop.eup %1942 }
 0x24b   :  { %v879_v31 = vadd.f32 1.0, %v1943_v58 }
 0x24c   :  { %v1945_v48 = vpop.eup %1944 }
 0x24d   :  { %v1947_v60 = vpop.eup %1946  ;;  %v842_v8 = vmul.f32 %v1945_v48, %v840_v29  ;;  %1948 = vrcp.f32 %v879_v31  ;;  %vm847_vm12 = vweird.f32 %v1945_v48  ;;  %vm885_vm6 = vweird.f32 %v879_v31 }
 0x24e   :  { %v861_v51 = vmul.f32 %v1947_v60, %v859_v21  ;;  %1950 = vtanh.f32 %v835_v6  ;;  %vm866_vm13 = vweird.f32 %v1947_v60  ;;  %vm848_vm0 = vmor %vm846_vm14, %vm847_vm12 }
 0x24f   :  { %v843_v49 = vsub.f32 1.0, %v842_v8  ;;  %vm867_vm1 = vmor %vm865_vm15, %vm866_vm13 }
 0x250   :  { %v862_v11 = vsub.f32 1.0, %v861_v51  ;;  %v891_v51 = vand.u32 2147483648, %v879_v31 }
 0x251   :  { %v844_v3 = vmul.f32 %v1945_v48, %v843_v49  ;;  %v889_v49 = vand.u32 2147483647, %v879_v31 }
 0x252   :  { %v863_v10 = vmul.f32 %v1947_v60, %v862_v11  ;;  %v892_v11 = vor.u32 1.1754944e-38, %v891_v51 }
 0x253   :  { %v1949_v4 = vpop.eup %1948  ;;  %v845_v61 = vadd.f32 %v1945_v48, %v844_v3  ;;  %vm890_vm8 = vcmp.eq.f32.partialorder %v889_v49, 8.507059e+37 }
 0x254   :  { %v864_v17 = vadd.f32 %v1947_v60, %v863_v10  ;;  %v881_v38 = vmul.f32 %v1949_v4, %v879_v31  ;;  %v1951_v35 = vpop.eup %1950  ;;  %vm886_vm4 = vweird.f32 %v1949_v4  ;;  %v2809_v31 = vld [vmem:[#allocation17_spill] sm:$0xff] }
 0x255   :  { %v849_v12 = vsel %vm848_vm0, %v1945_v48, %v845_v61  ;;  %vm887_vm7 = vmor %vm885_vm6, %vm886_vm4 }
 0x256   :  { %v854_v22 = vsel %vm851_vm2, %v853_v46, %v849_v12  ;;  %v868_v20 = vsel %vm867_vm1, %v1947_v60, %v864_v17  ;;  %v882_v37 = vsub.f32 1.0, %v881_v38  ;;  %v2811_v12 = vld [vmem:[#allocation19_spill] sm:$0xff]  ;;  %vm1034_vm2 = vcmp.gt.s32.totalorder %v2507_v9, 3 }
 0x257   :  { %v873_v24 = vsel %vm870_vm3, %v872_v40, %v868_v20  ;;  %v896_v58 = vmul.f32 %v1951_v35, %v854_v22 }
 0x258   :  { %v895_v6 = vmul.f32 %v873_v24, %v2560_v7  ;;  %v883_v8 = vmul.f32 %v1949_v4, %v882_v37 }
 0x25a   :  { %v897_v29 = vadd.f32 %v896_v58, %v895_v6  ;;  %v884_v21 = vadd.f32 %v1949_v4, %v883_v8 }
 0x25c   :  { %1952 = vtanh.f32 %v897_v29  ;;  %v2606_v48 = vsel %vm902_vm5, %v897_v29, %v2560_v7  ;;  %v888_v60 = vsel %vm887_vm7, %v1949_v4, %v884_v21  ;;  %v2810_v4 = vld [vmem:[#allocation24_spill] sm:$0xff] }
 0x25d   :  { %v893_v62 = vsel %vm890_vm8, %v892_v11, %v888_v60  ;;  %v2812_v11 = vld [vmem:[#allocation18_spill] sm:$0xff] }
 0x262   :  { %v1953_v5 = vpop.eup %1952 }
 0x263   :  { %v899_v3 = vmul.f32 %v1953_v5, %v893_v62 }
 0x265   :  { %v2609_v45 = vsel %vm902_vm5, %v899_v3, %v2563_v56 }
 0x266   :  { %v912_v10 = vpack.c.bf16 %v2609_v45, %v2609_v45 }
 0x268   :  { %921 = vmatmul.bf16.vlgmr.msra.gmra.mxu0 %v912_v10  ;;  %934 = vmatmul.bf16.vlgmr.msrb.gmra.mxu1 %v912_v10 }
 0x269   :  { %947 = vmatmul.bf16.vlgmr.msra.gmra.mxu2 %v912_v10  ;;  %960 = vmatmul.bf16.vlgmr.msra.gmra.mxu3 %v912_v10 }
 0x26a   :  { %1177 = vmatpush.bf16.msra.mxu0 %v2203_v19  ;;  %1190 = vmatpush.bf16.msrb.mxu1 %v2201_v18 }
 0x26b   :  { %1203 = vmatpush.bf16.msra.mxu2 %v2224_v36  ;;  %1216 = vmatpush.bf16.msra.mxu3 %v2211_v26 }
 0x26e   :  { %1178 = vmatpush.bf16.msra.mxu0 %v2219_v30  ;;  %1191 = vmatpush.bf16.msrb.mxu1 %v2216_v27 }
 0x26f   :  { %1204 = vmatpush.bf16.msra.mxu2 %v2234_v44  ;;  %1217 = vmatpush.bf16.msra.mxu3 %v2222_v32 }
 0x272   :  { %1179 = vmatpush.bf16.msra.mxu0 %v2231_v43  ;;  %1192 = vmatpush.bf16.msrb.mxu1 %v2228_v39 }
 0x273   :  { %1205 = vmatpush.bf16.msra.mxu2 %v2242_v54  ;;  %1218 = vmatpush.bf16.msra.mxu3 %v2236_v50 }
 0x276   :  { %1180 = vmatpush.bf16.msra.mxu0 %v2245_v57  ;;  %1193 = vmatpush.bf16.msrb.mxu1 %v2240_v53 }
 0x277   :  { %1206 = vmatpush.bf16.msra.mxu2 %v2257_v0  ;;  %1219 = vmatpush.bf16.msra.mxu3 %v2253_v63 }
 0x27a   :  { %1181 = vmatpush.bf16.msra.mxu0 %v2260_v1  ;;  %1194 = vmatpush.bf16.msrb.mxu1 %v2279_v16 }
 0x27b   :  { %1207 = vmatpush.bf16.msra.mxu2 %v2272_v13  ;;  %1220 = vmatpush.bf16.msra.mxu3 %v2274_v14 }
 0x27e   :  { %1182 = vmatpush.bf16.msra.mxu0 %v2277_v15  ;;  %1195 = vmatpush.bf16.msrb.mxu1 %v2285_v28 }
 0x27f   :  { %1208 = vmatpush.bf16.msra.mxu2 %v2288_v33  ;;  %1221 = vmatpush.bf16.msra.mxu3 %v2282_v23 }
 0x282   :  { %1183 = vmatpush.bf16.msra.mxu0 %v2291_v34  ;;  %1196 = vmatpush.bf16.msrb.mxu1 %v2318_v59 }
 0x283   :  { %1209 = vmatpush.bf16.msra.mxu2 %v2298_v42  ;;  %1222 = vmatpush.bf16.msra.mxu3 %v2294_v41 }
 0x286   :  { %1184 = vmatpush.bf16.msra.mxu0 %v2301_v47  ;;  %1197 = vmatpush.bf16.msrb.mxu1 %v2323_v2 }
 0x287   :  { %1210 = vmatpush.bf16.msra.mxu2 %v2310_v55  ;;  %1223 = vmatpush.bf16.msra.mxu3 %v2307_v52 }
 0x2e5   :  { %v922_v7 = vpop.f32.mrf.mxu0  ;;  %v935_v56 = vpop.f32.mrf.mxu1 }
 0x2e6   :  { %v965_v25 = vadd.f32 %v922_v7, %v2809_v31  ;;  %v966_v61 = vadd.f32 %v935_v56, %v2810_v4 }
 0x2e8   :  { %v1827_v46 = vmul.f32 -1.442695, %v965_v25  ;;  %v1828_v17 = vmul.f32 -1.442695, %v966_v61 }
 0x2ea   :  { %1954 = vpow2.f32 %v1827_v46 }
 0x2eb   :  { %1956 = vpow2.f32 %v1828_v17 }
 0x2ec   :  { %v948_v38 = vpop.f32.mrf.mxu2  ;;  %v961_v40 = vpop.f32.mrf.mxu3 }
 0x2ed   :  { %v968_v35 = vadd.f32 %v961_v40, %v2811_v12  ;;  %v924_v22 = vpop.f32.mrf.mxu0  ;;  %v937_v20 = vpop.f32.mrf.mxu1  ;;  %v967_v5 = vadd.f32 %v948_v38, %v2812_v11 }
 0x2ef   :  { %v1829_v37 = vmul.f32 -1.442695, %v968_v35 }
 0x2f0   :  { %v1955_v24 = vpop.eup %1954 }
 0x2f1   :  { %v1957_v58 = vpop.eup %1956  ;;  %v972_v6 = vadd.f32 1.0, %v1955_v24  ;;  %1958 = vpow2.f32 %v1829_v37 }
 0x2f2   :  { %v991_v8 = vadd.f32 1.0, %v1957_v58 }
 0x2f3   :  { %1960 = vrcp.f32 %v972_v6  ;;  %v984_v31 = vand.u32 2147483648, %v972_v6  ;;  %v982_v61 = vand.u32 2147483647, %v972_v6  ;;  %vm978_vm11 = vweird.f32 %v972_v6 }
 0x2f4   :  { %1962 = vrcp.f32 %v991_v8  ;;  %v950_v29 = vpop.f32.mrf.mxu2  ;;  %v963_v21 = vpop.f32.mrf.mxu3  ;;  %v1003_v25 = vand.u32 2147483648, %v991_v8  ;;  %v1001_v17 = vand.u32 2147483647, %v991_v8  ;;  %vm997_vm12 = vweird.f32 %v991_v8 }
 0x2f5   :  { %v985_v38 = vor.u32 1.1754944e-38, %v984_v31  ;;  %vm983_vm15 = vcmp.eq.f32.partialorder %v982_v61, 8.507059e+37 }
 0x2f6   :  { %v1004_v20 = vor.u32 1.1754944e-38, %v1003_v25  ;;  %vm1002_vm0 = vcmp.eq.f32.partialorder %v1001_v17, 8.507059e+37 }
 0x2f7   :  { %v1959_v51 = vpop.eup %1958 }
 0x2f8   :  { %v1011_v49 = vadd.f32 1.0, %v1959_v51 }
 0x2f9   :  { %v1961_v60 = vpop.eup %1960 }
 0x2fa   :  { %v1963_v62 = vpop.eup %1962  ;;  %v974_v3 = vmul.f32 %v1961_v60, %v972_v6  ;;  %1964 = vrcp.f32 %v1011_v49  ;;  %vm979_vm9 = vweird.f32 %v1961_v60  ;;  %vm1017_vm3 = vweird.f32 %v1011_v49 }
 0x2fb   :  { %v993_v10 = vmul.f32 %v1963_v62, %v991_v8  ;;  %1966 = vtanh.f32 %v967_v5  ;;  %vm998_vm10 = vweird.f32 %v1963_v62  ;;  %vm980_vm13 = vmor %vm978_vm11, %vm979_vm9 }
 0x2fc   :  { %v975_v7 = vsub.f32 1.0, %v974_v3  ;;  %vm999_vm14 = vmor %vm997_vm12, %vm998_vm10 }
 0x2fd   :  { %v994_v56 = vsub.f32 1.0, %v993_v10  ;;  %v1023_v10 = vand.u32 2147483648, %v1011_v49 }
 0x2fe   :  { %v976_v4 = vmul.f32 %v1961_v60, %v975_v7  ;;  %v1021_v7 = vand.u32 2147483647, %v1011_v49 }
 0x2ff   :  { %v995_v46 = vmul.f32 %v1963_v62, %v994_v56  ;;  %v1024_v56 = vor.u32 1.1754944e-38, %v1023_v10 }
 0x300   :  { %v1965_v40 = vpop.eup %1964  ;;  %v977_v12 = vadd.f32 %v1961_v60, %v976_v4  ;;  %vm1022_vm5 = vcmp.eq.f32.partialorder %v1021_v7, 8.507059e+37 }
 0x301   :  { %v996_v35 = vadd.f32 %v1963_v62, %v995_v46  ;;  %v1013_v22 = vmul.f32 %v1965_v40, %v1011_v49  ;;  %v1967_v24 = vpop.eup %1966  ;;  %vm1018_vm1 = vweird.f32 %v1965_v40  ;;  %v2813_v49 = vld [vmem:[#allocation20_spill] sm:$0xff] }
 0x302   :  { %v981_v37 = vsel %vm980_vm13, %v1961_v60, %v977_v12  ;;  %vm1019_vm4 = vmor %vm1017_vm3, %vm1018_vm1 }
 0x303   :  { %v986_v58 = vsel %vm983_vm15, %v985_v38, %v981_v37  ;;  %v1000_v29 = vsel %vm999_vm14, %v1963_v62, %v996_v35  ;;  %v1014_v21 = vsub.f32 1.0, %v1013_v22  ;;  %v2815_v37 = vld [vmem:[#allocation22_spill] sm:$0xff]  ;;  %vm1166_vm15 = vcmp.gt.s32.totalorder %v2507_v9, 4 }
 0x304   :  { %v1005_v51 = vsel %vm1002_vm0, %v1004_v20, %v1000_v29  ;;  %v1028_v11 = vmul.f32 %v1967_v24, %v986_v58 }
 0x305   :  { %v1027_v5 = vmul.f32 %v1005_v51, %v2606_v48  ;;  %v1015_v3 = vmul.f32 %v1965_v40, %v1014_v21 }
 0x307   :  { %v1029_v6 = vadd.f32 %v1028_v11, %v1027_v5  ;;  %v1016_v8 = vadd.f32 %v1965_v40, %v1015_v3 }
 0x309   :  { %1968 = vtanh.f32 %v1029_v6  ;;  %v2652_v60 = vsel %vm1034_vm2, %v1029_v6, %v2606_v48  ;;  %v1020_v62 = vsel %vm1019_vm4, %v1965_v40, %v1016_v8  ;;  %v2814_v40 = vld [vmem:[#allocation27_spill] sm:$0xff] }
 0x30a   :  { %v1025_v25 = vsel %vm1022_vm5, %v1024_v56, %v1020_v62  ;;  %v2816_v56 = vld [vmem:[#allocation21_spill] sm:$0xff] }
 0x30f   :  { %v1969_v31 = vpop.eup %1968 }
 0x310   :  { %v1031_v4 = vmul.f32 %v1969_v31, %v1025_v25 }
 0x312   :  { %v2655_v61 = vsel %vm1034_vm2, %v1031_v4, %v2609_v45 }
 0x313   :  { %v1044_v46 = vpack.c.bf16 %v2655_v61, %v2655_v61 }
 0x315   :  { %1053 = vmatmul.bf16.vlgmr.msrb.gmra.mxu0 %v1044_v46  ;;  %1066 = vmatmul.bf16.vlgmr.msra.gmra.mxu1 %v1044_v46 }
 0x316   :  { %1079 = vmatmul.bf16.vlgmr.msrb.gmra.mxu2 %v1044_v46  ;;  %1092 = vmatmul.bf16.vlgmr.msrb.gmra.mxu3 %v1044_v46 }
 0x317   :  { %1309 = vmatpush.bf16.msrb.mxu0 %v2203_v19  ;;  %1322 = vmatpush.bf16.msra.mxu1 %v2201_v18 }
 0x318   :  { %1335 = vmatpush.bf16.msrb.mxu2 %v2224_v36  ;;  %1348 = vmatpush.bf16.msrb.mxu3 %v2211_v26 }
 0x31b   :  { %1310 = vmatpush.bf16.msrb.mxu0 %v2219_v30  ;;  %1323 = vmatpush.bf16.msra.mxu1 %v2216_v27 }
 0x31c   :  { %1336 = vmatpush.bf16.msrb.mxu2 %v2234_v44  ;;  %1349 = vmatpush.bf16.msrb.mxu3 %v2222_v32 }
 0x31f   :  { %1311 = vmatpush.bf16.msrb.mxu0 %v2231_v43  ;;  %1324 = vmatpush.bf16.msra.mxu1 %v2228_v39 }
 0x320   :  { %1337 = vmatpush.bf16.msrb.mxu2 %v2242_v54  ;;  %1350 = vmatpush.bf16.msrb.mxu3 %v2236_v50 }
 0x323   :  { %1312 = vmatpush.bf16.msrb.mxu0 %v2245_v57  ;;  %1325 = vmatpush.bf16.msra.mxu1 %v2240_v53 }
 0x324   :  { %1338 = vmatpush.bf16.msrb.mxu2 %v2257_v0  ;;  %1351 = vmatpush.bf16.msrb.mxu3 %v2253_v63 }
 0x327   :  { %1313 = vmatpush.bf16.msrb.mxu0 %v2260_v1  ;;  %1326 = vmatpush.bf16.msra.mxu1 %v2279_v16 }
 0x328   :  { %1339 = vmatpush.bf16.msrb.mxu2 %v2272_v13  ;;  %1352 = vmatpush.bf16.msrb.mxu3 %v2274_v14 }
 0x32b   :  { %1314 = vmatpush.bf16.msrb.mxu0 %v2277_v15  ;;  %1327 = vmatpush.bf16.msra.mxu1 %v2285_v28 }
 0x32c   :  { %1340 = vmatpush.bf16.msrb.mxu2 %v2288_v33  ;;  %1353 = vmatpush.bf16.msrb.mxu3 %v2282_v23 }
 0x32f   :  { %1315 = vmatpush.bf16.msrb.mxu0 %v2291_v34  ;;  %1328 = vmatpush.bf16.msra.mxu1 %v2318_v59 }
 0x330   :  { %1341 = vmatpush.bf16.msrb.mxu2 %v2298_v42  ;;  %1354 = vmatpush.bf16.msrb.mxu3 %v2294_v41 }
 0x333   :  { %1316 = vmatpush.bf16.msrb.mxu0 %v2301_v47  ;;  %1329 = vmatpush.bf16.msra.mxu1 %v2323_v2 }
 0x334   :  { %1342 = vmatpush.bf16.msrb.mxu2 %v2310_v55  ;;  %1355 = vmatpush.bf16.msrb.mxu3 %v2307_v52 }
 0x392   :  { %v1054_v48 = vpop.f32.mrf.mxu0  ;;  %v1067_v45 = vpop.f32.mrf.mxu1 }
 0x393   :  { %v1097_v17 = vadd.f32 %v1054_v48, %v2813_v49  ;;  %v1098_v12 = vadd.f32 %v1067_v45, %v2814_v40 }
 0x395   :  { %v1830_v38 = vmul.f32 -1.442695, %v1097_v17  ;;  %v1831_v35 = vmul.f32 -1.442695, %v1098_v12 }
 0x397   :  { %1970 = vpow2.f32 %v1830_v38 }
 0x398   :  { %1972 = vpow2.f32 %v1831_v35 }
 0x399   :  { %v1080_v22 = vpop.f32.mrf.mxu2  ;;  %v1093_v20 = vpop.f32.mrf.mxu3 }
 0x39a   :  { %v1100_v24 = vadd.f32 %v1093_v20, %v2815_v37  ;;  %v1056_v58 = vpop.f32.mrf.mxu0  ;;  %v1069_v29 = vpop.f32.mrf.mxu1  ;;  %v1099_v31 = vadd.f32 %v1080_v22, %v2816_v56 }
 0x39c   :  { %v1832_v21 = vmul.f32 -1.442695, %v1100_v24 }
 0x39d   :  { %v1971_v51 = vpop.eup %1970 }
 0x39e   :  { %v1973_v11 = vpop.eup %1972  ;;  %v1104_v5 = vadd.f32 1.0, %v1971_v51  ;;  %1974 = vpow2.f32 %v1832_v21 }
 0x39f   :  { %v1123_v3 = vadd.f32 1.0, %v1973_v11 }
 0x3a0   :  { %1976 = vrcp.f32 %v1104_v5  ;;  %v1116_v49 = vand.u32 2147483648, %v1104_v5  ;;  %v1114_v12 = vand.u32 2147483647, %v1104_v5  ;;  %vm1110_vm8 = vweird.f32 %v1104_v5 }
 0x3a1   :  { %1978 = vrcp.f32 %v1123_v3  ;;  %v1082_v6 = vpop.f32.mrf.mxu2  ;;  %v1095_v8 = vpop.f32.mrf.mxu3  ;;  %v1135_v17 = vand.u32 2147483648, %v1123_v3  ;;  %v1133_v35 = vand.u32 2147483647, %v1123_v3  ;;  %vm1129_vm9 = vweird.f32 %v1123_v3 }
 0x3a2   :  { %v1117_v22 = vor.u32 1.1754944e-38, %v1116_v49  ;;  %vm1115_vm12 = vcmp.eq.f32.partialorder %v1114_v12, 8.507059e+37 }
 0x3a3   :  { %v1136_v29 = vor.u32 1.1754944e-38, %v1135_v17  ;;  %vm1134_vm13 = vcmp.eq.f32.partialorder %v1133_v35, 8.507059e+37 }
 0x3a4   :  { %v1975_v10 = vpop.eup %1974 }
 0x3a5   :  { %v1143_v7 = vadd.f32 1.0, %v1975_v10 }
 0x3a6   :  { %v1977_v62 = vpop.eup %1976 }
 0x3a7   :  { %v1979_v25 = vpop.eup %1978  ;;  %v1106_v4 = vmul.f32 %v1977_v62, %v1104_v5  ;;  %1980 = vrcp.f32 %v1143_v7  ;;  %vm1111_vm6 = vweird.f32 %v1977_v62  ;;  %vm1149_vm0 = vweird.f32 %v1143_v7 }
 0x3a8   :  { %v1125_v46 = vmul.f32 %v1979_v25, %v1123_v3  ;;  %1982 = vtanh.f32 %v1099_v31  ;;  %vm1130_vm7 = vweird.f32 %v1979_v25  ;;  %vm1112_vm10 = vmor %vm1110_vm8, %vm1111_vm6 }
 0x3a9   :  { %v1107_v48 = vsub.f32 1.0, %v1106_v4  ;;  %vm1131_vm11 = vmor %vm1129_vm9, %vm1130_vm7 }
 0x3aa   :  { %v1126_v45 = vsub.f32 1.0, %v1125_v46  ;;  %v1155_v46 = vand.u32 2147483648, %v1143_v7 }
 0x3ab   :  { %v1108_v40 = vmul.f32 %v1977_v62, %v1107_v48  ;;  %v1153_v48 = vand.u32 2147483647, %v1143_v7 }
 0x3ac   :  { %v1127_v38 = vmul.f32 %v1979_v25, %v1126_v45  ;;  %v1156_v45 = vor.u32 1.1754944e-38, %v1155_v46 }
 0x3ad   :  { %v1981_v20 = vpop.eup %1980  ;;  %v1109_v37 = vadd.f32 %v1977_v62, %v1108_v40  ;;  %vm1154_vm2 = vcmp.eq.f32.partialorder %v1153_v48, 8.507059e+37 }
 0x3ae   :  { %v1128_v24 = vadd.f32 %v1979_v25, %v1127_v38  ;;  %v1145_v58 = vmul.f32 %v1981_v20, %v1143_v7  ;;  %v1983_v51 = vpop.eup %1982  ;;  %vm1150_vm14 = vweird.f32 %v1981_v20 }
 0x3af   :  { %v1113_v21 = vsel %vm1112_vm10, %v1977_v62, %v1109_v37  ;;  %vm1151_vm1 = vmor %vm1149_vm0, %vm1150_vm14 }
 0x3b0   :  { %v1118_v11 = vsel %vm1115_vm12, %v1117_v22, %v1113_v21  ;;  %v1132_v6 = vsel %vm1131_vm11, %v1979_v25, %v1128_v24  ;;  %v1146_v8 = vsub.f32 1.0, %v1145_v58  ;;  %vm1298_vm12 = vcmp.gt.s32.totalorder %v2507_v9, 5 }
 0x3b1   :  { %v1137_v10 = vsel %vm1134_vm13, %v1136_v29, %v1132_v6  ;;  %v1160_v56 = vmul.f32 %v1983_v51, %v1118_v11 }
 0x3b2   :  { %v1159_v31 = vmul.f32 %v1137_v10, %v2652_v60  ;;  %v1147_v4 = vmul.f32 %v1981_v20, %v1146_v8 }
 0x3b4   :  { %v1161_v5 = vadd.f32 %v1160_v56, %v1159_v31  ;;  %v1148_v3 = vadd.f32 %v1981_v20, %v1147_v4 }
 0x3b6   :  { %1984 = vtanh.f32 %v1161_v5  ;;  %v2698_v62 = vsel %vm1166_vm15, %v1161_v5, %v2652_v60  ;;  %v1152_v25 = vsel %vm1151_vm1, %v1981_v20, %v1148_v3 }
 0x3b7   :  { %v1157_v17 = vsel %vm1154_vm2, %v1156_v45, %v1152_v25 }
 0x3bc   :  { %v1985_v49 = vpop.eup %1984 }
 0x3bd   :  { %v1163_v40 = vmul.f32 %v1985_v49, %v1157_v17 }
 0x3bf   :  { %v2701_v12 = vsel %vm1166_vm15, %v1163_v40, %v2655_v61 }
 0x3c0   :  { %v1176_v38 = vpack.c.bf16 %v2701_v12, %v2701_v12 }
 0x3c2   :  { %1185 = vmatmul.bf16.vlgmr.msra.gmra.mxu0 %v1176_v38  ;;  %1198 = vmatmul.bf16.vlgmr.msrb.gmra.mxu1 %v1176_v38 }
 0x3c3   :  { %1211 = vmatmul.bf16.vlgmr.msra.gmra.mxu2 %v1176_v38  ;;  %1224 = vmatmul.bf16.vlgmr.msra.gmra.mxu3 %v1176_v38 }
 0x3c4   :  { %1441 = vmatpush.bf16.msra.mxu0 %v2203_v19  ;;  %1454 = vmatpush.bf16.msrb.mxu1 %v2201_v18 }
 0x3c5   :  { %1467 = vmatpush.bf16.msra.mxu2 %v2224_v36  ;;  %1480 = vmatpush.bf16.msra.mxu3 %v2211_v26  ;;  %v2817_v26 = vld [vmem:[#allocation23_spill] sm:$0xff] }
 0x3c8   :  { %1442 = vmatpush.bf16.msra.mxu0 %v2219_v30  ;;  %1455 = vmatpush.bf16.msrb.mxu1 %v2216_v27  ;;  %v2818_v30 = vld [vmem:[#allocation30_spill] sm:$0xff] }
 0x3c9   :  { %1468 = vmatpush.bf16.msra.mxu2 %v2234_v44  ;;  %1481 = vmatpush.bf16.msra.mxu3 %v2222_v32 }
 0x3cc   :  { %1443 = vmatpush.bf16.msra.mxu0 %v2231_v43  ;;  %1456 = vmatpush.bf16.msrb.mxu1 %v2228_v39 }
 0x3cd   :  { %1469 = vmatpush.bf16.msra.mxu2 %v2242_v54  ;;  %1482 = vmatpush.bf16.msra.mxu3 %v2236_v50  ;;  %v2819_v50 = vld [vmem:[#allocation26_spill] sm:$0xff] }
 0x3d0   :  { %1444 = vmatpush.bf16.msra.mxu0 %v2245_v57  ;;  %1457 = vmatpush.bf16.msrb.mxu1 %v2240_v53 }
 0x3d1   :  { %1470 = vmatpush.bf16.msra.mxu2 %v2257_v0  ;;  %1483 = vmatpush.bf16.msra.mxu3 %v2253_v63 }
 0x3d4   :  { %1445 = vmatpush.bf16.msra.mxu0 %v2260_v1  ;;  %1458 = vmatpush.bf16.msrb.mxu1 %v2279_v16 }
 0x3d5   :  { %1471 = vmatpush.bf16.msra.mxu2 %v2272_v13  ;;  %1484 = vmatpush.bf16.msra.mxu3 %v2274_v14 }
 0x3d8   :  { %1446 = vmatpush.bf16.msra.mxu0 %v2277_v15  ;;  %1459 = vmatpush.bf16.msrb.mxu1 %v2285_v28 }
 0x3d9   :  { %1472 = vmatpush.bf16.msra.mxu2 %v2288_v33  ;;  %1485 = vmatpush.bf16.msra.mxu3 %v2282_v23 }
 0x3dc   :  { %1447 = vmatpush.bf16.msra.mxu0 %v2291_v34  ;;  %1460 = vmatpush.bf16.msrb.mxu1 %v2318_v59  ;;  %v2820_v34 = vld [vmem:[#allocation25_spill] sm:$0xff] }
 0x3dd   :  { %1473 = vmatpush.bf16.msra.mxu2 %v2298_v42  ;;  %1486 = vmatpush.bf16.msra.mxu3 %v2294_v41 }
 0x3e0   :  { %1448 = vmatpush.bf16.msra.mxu0 %v2301_v47  ;;  %1461 = vmatpush.bf16.msrb.mxu1 %v2323_v2 }
 0x3e1   :  { %1474 = vmatpush.bf16.msra.mxu2 %v2310_v55  ;;  %1487 = vmatpush.bf16.msra.mxu3 %v2307_v52 }
 0x43f   :  { %v1186_v18 = vpop.f32.mrf.mxu0  ;;  %v1199_v19 = vpop.f32.mrf.mxu1 }
 0x440   :  { %v1229_v27 = vadd.f32 %v1186_v18, %v2817_v26  ;;  %v1230_v32 = vadd.f32 %v1199_v19, %v2818_v30  ;;  %v2821_v30 = vld [vmem:[#allocation15_spill] sm:$0xff] }
 0x442   :  { %v1833_v36 = vmul.f32 -1.442695, %v1229_v27  ;;  %v1834_v39 = vmul.f32 -1.442695, %v1230_v32 }
 0x444   :  { %1986 = vpow2.f32 %v1833_v36  ;;  %v2822_v36 = vld [vmem:[#allocation33_spill] sm:$0xff] }
 0x445   :  { %1988 = vpow2.f32 %v1834_v39 }
 0x446   :  { %v1212_v43 = vpop.f32.mrf.mxu2  ;;  %v1225_v44 = vpop.f32.mrf.mxu3 }
 0x447   :  { %v1232_v53 = vadd.f32 %v1225_v44, %v2819_v50  ;;  %v1188_v54 = vpop.f32.mrf.mxu0  ;;  %v1201_v57 = vpop.f32.mrf.mxu1  ;;  %v1231_v41 = vadd.f32 %v1212_v43, %v2820_v34 }
 0x449   :  { %v1835_v63 = vmul.f32 -1.442695, %v1232_v53  ;;  %v2823_v53 = vld [vmem:[#allocation29_spill] sm:$0xff] }
 0x44a   :  { %v1987_v0 = vpop.eup %1986 }
 0x44b   :  { %v1989_v1 = vpop.eup %1988  ;;  %v1236_v13 = vadd.f32 1.0, %v1987_v0  ;;  %1990 = vpow2.f32 %v1835_v63 }
 0x44c   :  { %v1255_v14 = vadd.f32 1.0, %v1989_v1 }
 0x44d   :  { %1992 = vrcp.f32 %v1236_v13  ;;  %v1248_v2 = vand.u32 2147483648, %v1236_v13  ;;  %v1246_v7 = vand.u32 2147483647, %v1236_v13  ;;  %vm1242_vm5 = vweird.f32 %v1236_v13 }
 0x44e   :  { %1994 = vrcp.f32 %v1255_v14  ;;  %v1214_v15 = vpop.f32.mrf.mxu2  ;;  %v1227_v16 = vpop.f32.mrf.mxu3  ;;  %v1267_v60 = vand.u32 2147483648, %v1255_v14  ;;  %v1265_v20 = vand.u32 2147483647, %v1255_v14  ;;  %vm1261_vm6 = vweird.f32 %v1255_v14 }
 0x44f   :  { %v1249_v24 = vor.u32 1.1754944e-38, %v1248_v2  ;;  %vm1247_vm9 = vcmp.eq.f32.partialorder %v1246_v7, 8.507059e+37 }
 0x450   :  { %v1268_v21 = vor.u32 1.1754944e-38, %v1267_v60  ;;  %vm1266_vm10 = vcmp.eq.f32.partialorder %v1265_v20, 8.507059e+37 }
 0x451   :  { %v1991_v23 = vpop.eup %1990 }
 0x452   :  { %v1275_v28 = vadd.f32 1.0, %v1991_v23 }
 0x453   :  { %v1993_v33 = vpop.eup %1992 }
 0x454   :  { %v1995_v42 = vpop.eup %1994  ;;  %v1238_v47 = vmul.f32 %v1993_v33, %v1236_v13  ;;  %1996 = vrcp.f32 %v1275_v28  ;;  %vm1243_vm3 = vweird.f32 %v1993_v33  ;;  %v1287_v48 = vand.u32 2147483648, %v1275_v28 }
 0x455   :  { %v1257_v52 = vmul.f32 %v1995_v42, %v1255_v14  ;;  %1998 = vtanh.f32 %v1231_v41  ;;  %vm1262_vm4 = vweird.f32 %v1995_v42  ;;  %vm1244_vm7 = vmor %vm1242_vm5, %vm1243_vm3  ;;  %vm1281_vm13 = vweird.f32 %v1275_v28  ;;  %v2824_v41 = vld [vmem:[#allocation28_spill] sm:$0xff] }
 0x456   :  { %v1239_v55 = vsub.f32 1.0, %v1238_v47  ;;  %vm1263_vm8 = vmor %vm1261_vm6, %vm1262_vm4  ;;  %v1285_v45 = vand.u32 2147483647, %v1275_v28  ;;  %v1288_v17 = vor.u32 1.1754944e-38, %v1287_v48 }
 0x457   :  { %v1258_v59 = vsub.f32 1.0, %v1257_v52 }
 0x458   :  { %v1240_v61 = vmul.f32 %v1993_v33, %v1239_v55  ;;  %vm1286_vm15 = vcmp.eq.f32.partialorder %v1285_v45, 8.507059e+37 }
 0x459   :  { %v1259_v35 = vmul.f32 %v1995_v42, %v1258_v59 }
 0x45a   :  { %v1997_v37 = vpop.eup %1996  ;;  %v1241_v22 = vadd.f32 %v1993_v33, %v1240_v61 }
 0x45b   :  { %v1260_v58 = vadd.f32 %v1995_v42, %v1259_v35  ;;  %v1277_v29 = vmul.f32 %v1997_v37, %v1275_v28  ;;  %v1999_v11 = vpop.eup %1998  ;;  %vm1282_vm11 = vweird.f32 %v1997_v37 }
 0x45c   :  { %v1245_v51 = vsel %vm1244_vm7, %v1993_v33, %v1241_v22  ;;  %vm1283_vm14 = vmor %vm1281_vm13, %vm1282_vm11 }
 0x45d   :  { %v1250_v6 = vsel %vm1247_vm9, %v1249_v24, %v1245_v51  ;;  %v1264_v8 = vsel %vm1263_vm8, %v1995_v42, %v1260_v58  ;;  %v1278_v10 = vsub.f32 1.0, %v1277_v29  ;;  %vm1430_vm9 = vcmp.gt.s32.totalorder %v2507_v9, 6 }
 0x45e   :  { %v1269_v56 = vsel %vm1266_vm10, %v1268_v21, %v1264_v8  ;;  %v1292_v31 = vmul.f32 %v1999_v11, %v1250_v6 }
 0x45f   :  { %v1291_v4 = vmul.f32 %v1269_v56, %v2698_v62  ;;  %v1279_v5 = vmul.f32 %v1997_v37, %v1278_v10 }
 0x461   :  { %v1293_v3 = vadd.f32 %v1292_v31, %v1291_v4  ;;  %v1280_v46 = vadd.f32 %v1997_v37, %v1279_v5 }
 0x463   :  { %2000 = vtanh.f32 %v1293_v3  ;;  %v2744_v25 = vsel %vm1298_vm12, %v1293_v3, %v2698_v62  ;;  %v1284_v49 = vsel %vm1283_vm14, %v1997_v37, %v1280_v46 }
 0x464   :  { %v1289_v38 = vsel %vm1286_vm15, %v1288_v17, %v1284_v49 }
 0x469   :  { %v2001_v40 = vpop.eup %2000 }
 0x46a   :  { %v1295_v18 = vmul.f32 %v2001_v40, %v1289_v38 }
 0x46c   :  { %v2747_v19 = vsel %vm1298_vm12, %v1295_v18, %v2701_v12 }
 0x46d   :  { %v1308_v26 = vpack.c.bf16 %v2747_v19, %v2747_v19 }
 0x46f   :  { %1317 = vmatmul.bf16.vlgmr.msrb.gmra.mxu0 %v1308_v26  ;;  %1330 = vmatmul.bf16.vlgmr.msra.gmra.mxu1 %v1308_v26 }
 0x470   :  { %1343 = vmatmul.bf16.vlgmr.msrb.gmra.mxu2 %v1308_v26  ;;  %1356 = vmatmul.bf16.vlgmr.msrb.gmra.mxu3 %v1308_v26 }
 0x4ec   :  { %v1318_v62 = vpop.f32.mrf.mxu0  ;;  %v1331_v27 = vpop.f32.mrf.mxu1 }
 0x4ed   :  { %v1361_v32 = vadd.f32 %v1318_v62, %v2821_v30  ;;  %v1362_v39 = vadd.f32 %v1331_v27, %v2822_v36  ;;  %v1583_v36 = vld [vmem:[#allocation8 + $0x68] sm:$0xff] }
 0x4ef   :  { %v1836_v43 = vmul.f32 -1.442695, %v1361_v32  ;;  %v1837_v44 = vmul.f32 -1.442695, %v1362_v39  ;;  %v1584_v32 = vld [vmem:[#allocation8 + $0x70] sm:$0xff]  ;;  %v1582_v39 = vld [vmem:[#allocation8 + $0x60] sm:$0xff] }
 0x4f1   :  { %2002 = vpow2.f32 %v1836_v43  ;;  %v1581_v43 = vld [vmem:[#allocation8 + $0x58] sm:$0xff] }
 0x4f2   :  { %2004 = vpow2.f32 %v1837_v44  ;;  %v1580_v44 = vld [vmem:[#allocation8 + $0x50] sm:$0xff] }
 0x4f3   :  { %v1344_v50 = vpop.f32.mrf.mxu2  ;;  %v1357_v12 = vpop.f32.mrf.mxu3 }
 0x4f4   :  { %v1364_v54 = vadd.f32 %v1357_v12, %v2823_v53  ;;  %v1320_v57 = vpop.f32.mrf.mxu0  ;;  %v1333_v63 = vpop.f32.mrf.mxu1  ;;  %v1363_v42 = vadd.f32 %v1344_v50, %v2824_v41  ;;  %v1578_v50 = vld [vmem:[#allocation8 + $0x40] sm:$0xff]  ;;  %v1577_v12 = vld [vmem:[#allocation8 + $0x38] sm:$0xff]  ;;  %v2825_v53 = vld [vmem:[#allocation14_spill] sm:$0xff] }
 0x4f5   :  { %v1572_v41 = vld [vmem:[#allocation8 + $0x10] sm:$0xff] }
 0x4f6   :  { %v1838_v0 = vmul.f32 -1.442695, %v1364_v54  ;;  %v2826_v54 = vld [vmem:[#allocation16_spill] sm:$0xff] }
 0x4f7   :  { %v2003_v1 = vpop.eup %2002  ;;  %v190_v57 = vadd.f32 %v2826_v54, %v2825_v53 }
 0x4f8   :  { %v2005_v13 = vpop.eup %2004  ;;  %v1368_v14 = vadd.f32 1.0, %v2003_v1  ;;  %2006 = vpow2.f32 %v1838_v0  ;;  %v1576_v1 = vld [vmem:[#allocation8 + $0x30] sm:$0xff] }
 0x4f9   :  { %v1387_v15 = vadd.f32 1.0, %v2005_v13 }
 0x4fa   :  { %2008 = vrcp.f32 %v1368_v14  ;;  %v1380_v60 = vand.u32 2147483648, %v1368_v14  ;;  %v1378_v35 = vand.u32 2147483647, %v1368_v14  ;;  %vm1374_vm2 = vweird.f32 %v1368_v14 }
 0x4fb   :  { %2010 = vrcp.f32 %v1387_v15  ;;  %v1346_v16 = vpop.f32.mrf.mxu2  ;;  %v1359_v23 = vpop.f32.mrf.mxu3  ;;  %v1399_v61 = vand.u32 2147483648, %v1387_v15  ;;  %v1397_v37 = vand.u32 2147483647, %v1387_v15  ;;  %vm1393_vm3 = vweird.f32 %v1387_v15 }
 0x4fc   :  { %v1381_v58 = vor.u32 1.1754944e-38, %v1380_v60  ;;  %vm1379_vm6 = vcmp.eq.f32.partialorder %v1378_v35, 8.507059e+37  ;;  %v1575_v16 = vld [vmem:[#allocation8 + $0x28] sm:$0xff] }
 0x4fd   :  { %v1400_v51 = vor.u32 1.1754944e-38, %v1399_v61  ;;  %vm1398_vm7 = vcmp.eq.f32.partialorder %v1397_v37, 8.507059e+37  ;;  %v1571_v60 = vld [vmem:[#allocation8 + $0x8] sm:$0xff] }
 0x4fe   :  { %v2007_v28 = vpop.eup %2006 }
 0x4ff   :  { %v1407_v33 = vadd.f32 1.0, %v2007_v28 }
 0x500   :  { %v2009_v34 = vpop.eup %2008 }
 0x501   :  { %v2011_v47 = vpop.eup %2010  ;;  %v1370_v52 = vmul.f32 %v2009_v34, %v1368_v14  ;;  %2012 = vrcp.f32 %v1407_v33  ;;  %vm1375_vm0 = vweird.f32 %v2009_v34  ;;  %v1419_v45 = vand.u32 2147483648, %v1407_v33  ;;  %v2827_v14 = vld [vmem:[#allocation34_spill] sm:$0xff] }
 0x502   :  { %v1389_v55 = vmul.f32 %v2011_v47, %v1387_v15  ;;  %2014 = vtanh.f32 %v1363_v42  ;;  %vm1394_vm1 = vweird.f32 %v2011_v47  ;;  %vm1376_vm4 = vmor %vm1374_vm2, %vm1375_vm0  ;;  %vm1413_vm10 = vweird.f32 %v1407_v33 }
 0x503   :  { %v1371_v59 = vsub.f32 1.0, %v1370_v52  ;;  %vm1395_vm5 = vmor %vm1393_vm3, %vm1394_vm1  ;;  %v1417_v17 = vand.u32 2147483647, %v1407_v33  ;;  %v1420_v38 = vor.u32 1.1754944e-38, %v1419_v45  ;;  %v2828_v52 = vld [vmem:[#allocation32_spill] sm:$0xff] }
 0x504   :  { %v1390_v2 = vsub.f32 1.0, %v1389_v55 }
 0x505   :  { %v1372_v7 = vmul.f32 %v2009_v34, %v1371_v59  ;;  %vm1418_vm12 = vcmp.eq.f32.partialorder %v1417_v17, 8.507059e+37 }
 0x506   :  { %v1391_v20 = vmul.f32 %v2011_v47, %v1390_v2 }
 0x507   :  { %v2013_v22 = vpop.eup %2012  ;;  %v1373_v24 = vadd.f32 %v2009_v34, %v1372_v7  ;;  %v1570_v7 = vld [vmem:[#allocation8] sm:$0xff] }
 0x508   :  { %v1392_v29 = vadd.f32 %v2011_v47, %v1391_v20  ;;  %v1409_v21 = vmul.f32 %v2013_v22, %v1407_v33  ;;  %v2015_v6 = vpop.eup %2014  ;;  %vm1414_vm8 = vweird.f32 %v2013_v22  ;;  %v1574_v33 = vld [vmem:[#allocation8 + $0x20] sm:$0xff] }
 0x509   :  { %v1377_v11 = vsel %vm1376_vm4, %v2009_v34, %v1373_v24  ;;  %vm1415_vm11 = vmor %vm1413_vm10, %vm1414_vm8  ;;  %v1573_v34 = vld [vmem:[#allocation8 + $0x18] sm:$0xff] }
 0x50a   :  { %v1382_v8 = vsel %vm1379_vm6, %v1381_v58, %v1377_v11  ;;  %v1396_v10 = vsel %vm1395_vm5, %v2011_v47, %v1392_v29  ;;  %v1410_v56 = vsub.f32 1.0, %v1409_v21  ;;  %v2829_v11 = vld [vmem:[#allocation31_spill] sm:$0xff] }
 0x50b   :  { %v1401_v31 = vsel %vm1398_vm7, %v1400_v51, %v1396_v10  ;;  %v1424_v4 = vmul.f32 %v2015_v6, %v1382_v8 }
 0x50c   :  { %v1423_v5 = vmul.f32 %v1401_v31, %v2744_v25  ;;  %v1411_v3 = vmul.f32 %v2013_v22, %v1410_v56 }
 0x50e   :  { %v1425_v46 = vadd.f32 %v1424_v4, %v1423_v5  ;;  %v1412_v48 = vadd.f32 %v2013_v22, %v1411_v3 }
 0x510   :  { %2016 = vtanh.f32 %v1425_v46  ;;  %v2758_v49 = vsel %vm1430_vm9, %v1425_v46, %v2744_v25  ;;  %v1416_v40 = vsel %vm1415_vm11, %v2013_v22, %v1412_v48  ;;  %v1585_v25 = vld [vmem:[#allocation8 + $0x78] sm:$0xff] }
 0x511   :  { %v1421_v26 = vsel %vm1418_vm12, %v1420_v38, %v1416_v40  ;;  %1590 = vmatpush.msrb.mxu0 %v1585_v25 }
 0x513   :  { %1591 = vmatpush.msrb.mxu0 %v1584_v32 }
 0x515   :  { %1592 = vmatpush.msrb.mxu0 %v1583_v36 }
 0x516   :  { %v2017_v18 = vpop.eup %2016 }
 0x517   :  { %v1427_v62 = vmul.f32 %v2017_v18, %v1421_v26  ;;  %1593 = vmatpush.msrb.mxu0 %v1582_v39 }
 0x519   :  { %v2761_v27 = vsel %vm1430_vm9, %v1427_v62, %v2747_v19  ;;  %1594 = vmatpush.msrb.mxu0 %v1581_v43  ;;  %v1579_v19 = vld [vmem:[#allocation8 + $0x48] sm:$0xff]  ;;  %vm1562_vm9 = vcmp.gt.s32.totalorder %v2507_v9, 7 }
 0x51a   :  { %v1440_v30 = vpack.c.bf16 %v2761_v27, %v2761_v27 }
 0x51b   :  { %1595 = vmatpush.msrb.mxu0 %v1580_v44 }
 0x51c   :  { %1449 = vmatmul.bf16.vlgmr.msra.gmra.mxu0 %v1440_v30  ;;  %1462 = vmatmul.bf16.vlgmr.msrb.gmra.mxu1 %v1440_v30 }
 0x51d   :  { %1475 = vmatmul.bf16.vlgmr.msra.gmra.mxu2 %v1440_v30  ;;  %1488 = vmatmul.bf16.vlgmr.msra.gmra.mxu3 %v1440_v30 }
 0x51e   :  { %1596 = vmatpush.msrb.mxu0 %v1579_v19 }
 0x520   :  { %1597 = vmatpush.msrb.mxu0 %v1578_v50 }
 0x522   :  { %1598 = vmatpush.msrb.mxu0 %v1577_v12 }
 0x524   :  { %1599 = vmatpush.msrb.mxu0 %v1576_v1 }
 0x526   :  { %1600 = vmatpush.msrb.mxu0 %v1575_v16 }
 0x528   :  { %1601 = vmatpush.msrb.mxu0 %v1574_v33 }
 0x52a   :  { %1602 = vmatpush.msrb.mxu0 %v1573_v34 }
 0x52c   :  { %1603 = vmatpush.msrb.mxu0 %v1572_v41 }
 0x52e   :  { %1604 = vmatpush.msrb.mxu0 %v1571_v60 }
 0x530   :  { %1605 = vmatpush.msrb.mxu0 %v1570_v7 }
 0x599   :  { %v1450_v63 = vpop.f32.mrf.mxu0  ;;  %v1463_v0 = vpop.f32.mrf.mxu1 }
 0x59a   :  { %v1493_v13 = vadd.f32 %v1450_v63, %v190_v57  ;;  %v1494_v15 = vadd.f32 %v1463_v0, %v2827_v14 }
 0x59c   :  { %v1839_v23 = vmul.f32 -1.442695, %v1493_v13  ;;  %v1840_v28 = vmul.f32 -1.442695, %v1494_v15 }
 0x59e   :  { %2018 = vpow2.f32 %v1839_v23 }
 0x59f   :  { %2020 = vpow2.f32 %v1840_v28 }
 0x5a0   :  { %v1476_v42 = vpop.f32.mrf.mxu2  ;;  %v1489_v47 = vpop.f32.mrf.mxu3 }
 0x5a1   :  { %v1496_v55 = vadd.f32 %v1489_v47, %v2828_v52  ;;  %v1452_v59 = vpop.f32.mrf.mxu0  ;;  %v1465_v2 = vpop.f32.mrf.mxu1  ;;  %v1495_v6 = vadd.f32 %v1476_v42, %v2829_v11 }
 0x5a3   :  { %v1841_v61 = vmul.f32 -1.442695, %v1496_v55 }
 0x5a4   :  { %v2019_v35 = vpop.eup %2018 }
 0x5a5   :  { %v2021_v20 = vpop.eup %2020  ;;  %v1500_v37 = vadd.f32 1.0, %v2019_v35  ;;  %2022 = vpow2.f32 %v1841_v61 }
 0x5a6   :  { %v1519_v22 = vadd.f32 1.0, %v2021_v20 }
 0x5a7   :  { %2024 = vrcp.f32 %v1500_v37  ;;  %v1512_v5 = vand.u32 2147483648, %v1500_v37  ;;  %v1510_v48 = vand.u32 2147483647, %v1500_v37  ;;  %vm1506_vm15 = vweird.f32 %v1500_v37 }
 0x5a8   :  { %2026 = vrcp.f32 %v1519_v22  ;;  %v1478_v24 = vpop.f32.mrf.mxu2  ;;  %v1491_v58 = vpop.f32.mrf.mxu3  ;;  %v1531_v3 = vand.u32 2147483648, %v1519_v22  ;;  %v1529_v17 = vand.u32 2147483647, %v1519_v22  ;;  %vm1525_vm0 = vweird.f32 %v1519_v22 }
 0x5a9   :  { %v1513_v18 = vor.u32 1.1754944e-38, %v1512_v5  ;;  %vm1511_vm3 = vcmp.eq.f32.partialorder %v1510_v48, 8.507059e+37 }
 0x5aa   :  { %v1532_v30 = vor.u32 1.1754944e-38, %v1531_v3  ;;  %vm1530_vm4 = vcmp.eq.f32.partialorder %v1529_v17, 8.507059e+37 }
 0x5ab   :  { %v2023_v29 = vpop.eup %2022 }
 0x5ac   :  { %v1539_v21 = vadd.f32 1.0, %v2023_v29 }
 0x5ad   :  { %v2025_v51 = vpop.eup %2024 }
 0x5ae   :  { %v2027_v8 = vpop.eup %2026  ;;  %v1502_v10 = vmul.f32 %v2025_v51, %v1500_v37  ;;  %2028 = vrcp.f32 %v1539_v21  ;;  %vm1507_vm13 = vweird.f32 %v2025_v51  ;;  %v1551_v57 = vand.u32 2147483648, %v1539_v21 }
 0x5af   :  { %v1521_v56 = vmul.f32 %v2027_v8, %v1519_v22  ;;  %2030 = vtanh.f32 %v1495_v6  ;;  %vm1526_vm14 = vweird.f32 %v2027_v8  ;;  %vm1508_vm1 = vmor %vm1506_vm15, %vm1507_vm13  ;;  %vm1545_vm6 = vweird.f32 %v1539_v21 }
 0x5b0   :  { %v1503_v31 = vsub.f32 1.0, %v1502_v10  ;;  %vm1527_vm2 = vmor %vm1525_vm0, %vm1526_vm14  ;;  %v1549_v63 = vand.u32 2147483647, %v1539_v21  ;;  %v1552_v1 = vor.u32 1.1754944e-38, %v1551_v57 }
 0x5b1   :  { %v1522_v4 = vsub.f32 1.0, %v1521_v56 }
 0x5b2   :  { %v1504_v46 = vmul.f32 %v2025_v51, %v1503_v31  ;;  %vm1550_vm8 = vcmp.eq.f32.partialorder %v1549_v63, 8.507059e+37 }
 0x5b3   :  { %v1523_v45 = vmul.f32 %v2027_v8, %v1522_v4 }
 0x5b4   :  { %v2029_v40 = vpop.eup %2028  ;;  %v1505_v38 = vadd.f32 %v2025_v51, %v1504_v46 }
 0x5b5   :  { %v1524_v26 = vadd.f32 %v2027_v8, %v1523_v45  ;;  %v1541_v62 = vmul.f32 %v2029_v40, %v1539_v21  ;;  %v2031_v32 = vpop.eup %2030  ;;  %vm1546_vm5 = vweird.f32 %v2029_v40 }
 0x5b6   :  { %v1509_v25 = vsel %vm1508_vm1, %v2025_v51, %v1505_v38  ;;  %vm1547_vm7 = vmor %vm1545_vm6, %vm1546_vm5 }
 0x5b7   :  { %v1514_v36 = vsel %vm1511_vm3, %v1513_v18, %v1509_v25  ;;  %v1528_v39 = vsel %vm1527_vm2, %v2027_v8, %v1524_v26  ;;  %v1542_v43 = vsub.f32 1.0, %v1541_v62 }
 0x5b8   :  { %v1533_v44 = vsel %vm1530_vm4, %v1532_v30, %v1528_v39  ;;  %v1556_v19 = vmul.f32 %v2031_v32, %v1514_v36 }
 0x5b9   :  { %v1555_v50 = vmul.f32 %v1533_v44, %v2758_v49  ;;  %v1543_v12 = vmul.f32 %v2029_v40, %v1542_v43  ;;  %v1905_v49 = vld [vmem:[%s2785_s6] ss:$0 sm:$0xff] }
 0x5bb   :  { %v1557_v53 = vadd.f32 %v1556_v19, %v1555_v50  ;;  %v1544_v54 = vadd.f32 %v2029_v40, %v1543_v12 }
 0x5bd   :  { %2032 = vtanh.f32 %v1557_v53  ;;  %v1548_v0 = vsel %vm1547_vm7, %v2029_v40, %v1544_v54 }
 0x5be   :  { %v1553_v14 = vsel %vm1550_vm8, %v1552_v1, %v1548_v0 }
 0x5c3   :  { %v2033_v13 = vpop.eup %2032 }
 0x5c4   :  { %v1559_v15 = vmul.f32 %v2033_v13, %v1553_v14 }
 0x5c6   :  { %v1563_v16 = vsel %vm1562_vm9, %v1559_v15, %v2761_v27 }
 0x5c7   :  { %1606 = vmatmul.f32.vlgmr.msrb.gmra.mxu0 %v1563_v16 }
 0x644   :  { %v1607_v23 = vpop.f32.mrf.mxu0 }
 0x645   :  { %v1608_v28 = vadd.f32 %v1905_v49, %v1607_v23 }
 0x647   :  { %1610 = vst [vmem:[#allocation10] sm:$0xff] %v1608_v28 }
 0x648   :  { %1621 = dma.vmem_to_hbm [thread:$0]  %s1617_s16, 128, %s1619_s18, [#allocation7]  }
 0x649   :  { %2110 = dma.done.wait [#allocation7], 128  }
 0x64a   :  { %2111 = vsyncadd [#allocation7], 4294967168 }
 0x64b   :  { %1626 = vsyncpa [#allocation6], 1 }
 0x64c   :  { %1627 = vsyncpa [#allocation9], 1 }
 0x64d   :  { %1628 = vsyncpa [#allocation7], 1 }

</bundles_post_ra>
